<compile_context>
chip_gen: v5e
topology: v5e:2x2
jax: 0.10.0
libtpu: 0.0.40
codegen_flags: <defaults>
</compile_context>

<pallas_src>
import functools

import jax
import jax.numpy as jnp
from jax import lax
from jax.experimental import pallas as pl
from jax.experimental.pallas import tpu as pltpu

HIDDEN = 100            # PyTorch nn.LSTM(hidden_size=100)
HID_PAD = 128           # lane-aligned padded hidden; padded lanes stay exactly 0
GATES_PAD = 4 * HID_PAD
B_PAD = 8               # f32 sublane count
F_PAD = 8               # padded feature dim
BIAS_COL = F_PAD - 1    # constant-1 column carrying the folded LSTM bias
OUT_PAD = 128           # lane-dense padded output width


def harlstm_kernel(x_ref, wih_ref, whh_ref, w1_ref, b1_ref, w2_ref, b2_ref,
                   out_ref, gx_sc):
    # x_ref is time-major-flattened: row index = t * B_PAD + b, shape (T*B_PAD, F_PAD).
    tb = x_ref.shape[0]
    B = out_ref.shape[0]          # = B_PAD
    T = tb // B

    # ---- hoisted input projection: one matmul for every timestep; the combined
    #      LSTM bias rides in wih[BIAS_COL, :] against the constant-1 input column ----
    gx_sc[...] = jnp.dot(x_ref[...], wih_ref[...], preferred_element_type=jnp.float32)

    def sigmoid(v):
        # exact logistic via one EUP tanh + cheap VPU ops (halves EUP pushes vs exp+div)
        return 0.5 * jnp.tanh(0.5 * v) + 0.5

    # ---- serial recurrence: (h, c) live as loop carries (vregs), W_hh streamed from VMEM ----
    def step(t, carry):
        h, c = carry
        row = pl.multiple_of(t * B, B)
        gates = (gx_sc[pl.ds(row, B), :]
                 + jnp.dot(h, whh_ref[...], preferred_element_type=jnp.float32))
        # gate slab order i, f, g, o: c-critical gates lead, o pops last.
        i_g = sigmoid(gates[:, 0 * HID_PAD:1 * HID_PAD])
        f_g = sigmoid(gates[:, 1 * HID_PAD:2 * HID_PAD])
        g_g = jnp.tanh(gates[:, 2 * HID_PAD:3 * HID_PAD])
        o_g = sigmoid(gates[:, 3 * HID_PAD:4 * HID_PAD])
        c_new = f_g * c + i_g * g_g
        h_new = o_g * jnp.tanh(c_new)
        return h_new, c_new

    h0 = jnp.zeros((B, HID_PAD), jnp.float32)
    c0 = jnp.zeros((B, HID_PAD), jnp.float32)
    h, _ = lax.fori_loop(0, T, step, (h0, c0), unroll=min(T, 8))

    # ---- head: dropout(p=0.3) is identity in eval mode; ReLU(fc1) -> fc2 ----
    z1 = jnp.dot(h, w1_ref[...], preferred_element_type=jnp.float32) + b1_ref[...]
    z1 = jnp.maximum(z1, 0.0)
    z2 = jnp.dot(z1, w2_ref[...], preferred_element_type=jnp.float32) + b2_ref[...]
    out_ref[...] = z2.astype(out_ref.dtype)


@functools.partial(jax.jit, static_argnames=("n_outputs",))
def harlstm_forward(x, wih, whh, w1, b1, w2, b2, *, n_outputs):
    B, T, F = x.shape
    # One tiny fused prep expression: cast + zero-pad batch/features to (B_PAD, F_PAD),
    # set the bias-carrier column to 1.0, and lay out rows time-major (row = t*B_PAD + b)
    # so the kernel needs no relayout.
    x_tm = jnp.zeros((T, B_PAD, F_PAD), jnp.float32)
    x_tm = x_tm.at[:, :B, :F].set(jnp.transpose(x.astype(jnp.float32), (1, 0, 2)))
    x_tm = x_tm.at[:, :B, BIAS_COL].set(1.0)
    x_flat = x_tm.reshape(T * B_PAD, F_PAD)

    # VMEM budget: gx scratch + resident inputs/weights/output, with headroom.
    vmem_bytes = 4 * (T * B_PAD * GATES_PAD            # gx_sc (16 KiB per timestep)
                      + T * B_PAD * F_PAD              # x_flat
                      + F_PAD * GATES_PAD + HID_PAD * GATES_PAD
                      + HID_PAD * HID_PAD + HID_PAD
                      + HID_PAD * OUT_PAD + OUT_PAD
                      + B_PAD * OUT_PAD)
    vmem_limit = min(48 * 1024 * 1024,
                     max(8 * 1024 * 1024, 2 * vmem_bytes + (4 << 20)))

    vmem_spec = lambda: pl.BlockSpec(memory_space=pltpu.MemorySpace.VMEM)
    out = pl.pallas_call(
        harlstm_kernel,
        out_shape=jax.ShapeDtypeStruct((B_PAD, OUT_PAD), jnp.float32),
        in_specs=[vmem_spec() for _ in range(7)],
        out_specs=vmem_spec(),
        scratch_shapes=[pltpu.VMEM((T * B_PAD, GATES_PAD), jnp.float32)],  # gates_x for all t
        compiler_params=pltpu.CompilerParams(vmem_limit_bytes=vmem_limit),
    )(x_flat, wih, whh, w1, b1, w2, b2)
    return out[:B, :n_outputs]


def make_params(key, n_features, n_outputs):
    """Deterministic synthetic parameters in PyTorch layout."""
    ks = jax.random.split(key, 8)
    s = 0.1
    weight_ih = s * jax.random.normal(ks[0], (4 * HIDDEN, n_features), jnp.float32)
    weight_hh = s * jax.random.normal(ks[1], (4 * HIDDEN, HIDDEN), jnp.float32)
    bias_ih = s * jax.random.normal(ks[2], (4 * HIDDEN,), jnp.float32)
    bias_hh = s * jax.random.normal(ks[3], (4 * HIDDEN,), jnp.float32)
    fc1_w = s * jax.random.normal(ks[4], (HIDDEN, HIDDEN), jnp.float32)
    fc1_b = s * jax.random.normal(ks[5], (HIDDEN,), jnp.float32)
    fc2_w = s * jax.random.normal(ks[6], (n_outputs, HIDDEN), jnp.float32)
    fc2_b = s * jax.random.normal(ks[7], (n_outputs,), jnp.float32)
    return weight_ih, weight_hh, bias_ih, bias_hh, fc1_w, fc1_b, fc2_w, fc2_b


def pack_params_for_kernel(pt_params, n_features, n_outputs):
    """Transpose + zero-pad PyTorch-layout params into kernel layout (bias folded into wih)."""
    weight_ih, weight_hh, bias_ih, bias_hh, fc1_w, fc1_b, fc2_w, fc2_b = pt_params
    assert n_features < F_PAD, "need a free padded feature column for the folded bias"

    wih = jnp.zeros((F_PAD, GATES_PAD), jnp.float32)
    whh = jnp.zeros((HID_PAD, GATES_PAD), jnp.float32)
    for g in range(4):                                   # PyTorch gate order i, f, g, o
        src = slice(g * HIDDEN, (g + 1) * HIDDEN)
        dst = slice(g * HID_PAD, g * HID_PAD + HIDDEN)
        wih = wih.at[:n_features, dst].set(weight_ih[src, :].T)
        wih = wih.at[BIAS_COL, dst].set(bias_ih[src] + bias_hh[src])   # folded bias row
        whh = whh.at[:HIDDEN, dst].set(weight_hh[src, :].T)

    w1 = jnp.zeros((HID_PAD, HID_PAD), jnp.float32).at[:HIDDEN, :HIDDEN].set(fc1_w.T)
    b1 = jnp.zeros((1, HID_PAD), jnp.float32).at[0, :HIDDEN].set(fc1_b)
    w2 = jnp.zeros((HID_PAD, OUT_PAD), jnp.float32).at[:HIDDEN, :n_outputs].set(fc2_w.T)
    b2 = jnp.zeros((1, OUT_PAD), jnp.float32).at[0, :n_outputs].set(fc2_b)
    return wih, whh, w1, b1, w2, b2


def reference_forward(x, pt_params):
    """Pure-JAX reference matching PyTorch semantics (eval mode)."""
    weight_ih, weight_hh, bias_ih, bias_hh, fc1_w, fc1_b, fc2_w, fc2_b = pt_params
    B, T, _ = x.shape
    h = jnp.zeros((B, HIDDEN), jnp.float32)
    c = jnp.zeros((B, HIDDEN), jnp.float32)
    for t in range(T):
        g = x[:, t] @ weight_ih.T + bias_ih + h @ weight_hh.T + bias_hh
        i = jax.nn.sigmoid(g[:, 0:HIDDEN])
        f = jax.nn.sigmoid(g[:, HIDDEN:2 * HIDDEN])
        gg = jnp.tanh(g[:, 2 * HIDDEN:3 * HIDDEN])
        o = jax.nn.sigmoid(g[:, 3 * HIDDEN:4 * HIDDEN])
        c = f * c + i * gg
        h = o * jnp.tanh(c)
    z = jnp.maximum(h @ fc1_w.T + fc1_b, 0.0)
    return z @ fc2_w.T + fc2_b


if __name__ == "__main__":
    B, T, F, OUT = 2, 8, 4, 6          # n_timesteps=8, n_features=4, n_outputs=6
    key = jax.random.PRNGKey(0)
    kx, kp = jax.random.split(key)
    x = jax.random.normal(kx, (B, T, F), jnp.float32)

    pt_params = make_params(kp, F, OUT)
    kernel_params = pack_params_for_kernel(pt_params, F, OUT)

    out = harlstm_forward(x, *kernel_params, n_outputs=OUT)
    out = jax.block_until_ready(out)

    ref = reference_forward(x, pt_params)
    assert out.shape == (B, OUT)
    assert jnp.allclose(out, ref, rtol=1e-4, atol=1e-4), (out, ref)

    print("KERNEL_OK")
</pallas_src>

<mosaic_0001>
module attributes {stable_mosaic.version = 11 : i64} {
  func.func @harlstm_kernel(%arg0: memref<64x8xf32, #tpu.memory_space<vmem>>, %arg1: memref<8x512xf32, #tpu.memory_space<vmem>>, %arg2: memref<128x512xf32, #tpu.memory_space<vmem>>, %arg3: memref<128x128xf32, #tpu.memory_space<vmem>>, %arg4: memref<1x128xf32, #tpu.memory_space<vmem>>, %arg5: memref<128x128xf32, #tpu.memory_space<vmem>>, %arg6: memref<1x128xf32, #tpu.memory_space<vmem>>, %arg7: memref<8x128xf32, #tpu.memory_space<vmem>>, %arg8: memref<64x512xf32, #tpu.memory_space<vmem>>) attributes {dimension_semantics = [], scalar_prefetch = 0 : i64, scratch_operands = 1 : i64, tpu.core_type = #tpu.core_type<tc>} {
    %c0 = arith.constant 0 : index
    %c0_0 = arith.constant 0 : index
    %0 = vector.load %arg0[%c0, %c0_0] : memref<64x8xf32, #tpu.memory_space<vmem>>, vector<64x8xf32>
    %c0_1 = arith.constant 0 : index
    %c0_2 = arith.constant 0 : index
    %1 = vector.load %arg1[%c0_1, %c0_2] : memref<8x512xf32, #tpu.memory_space<vmem>>, vector<8x512xf32>
    %cst = arith.constant dense<0.000000e+00> : vector<64x512xf32>
    %2 = tpu.matmul %0, %1, %cst {dimension_numbers = #tpu.dot_dimension_numbers<[1], [0], [0], [1], [0, 0, 1, 1], [], []>} : vector<64x8xf32>, vector<8x512xf32>, vector<64x512xf32> -> vector<64x512xf32>
    %c0_3 = arith.constant 0 : index
    %c0_4 = arith.constant 0 : index
    %3 = vector.load %arg8[%c0_3, %c0_4] : memref<64x512xf32, #tpu.memory_space<vmem>>, vector<64x512xf32>
    tpu.vector_store %arg8[%c0_3, %c0_4], %2 {strides = array<i32>} : memref<64x512xf32, #tpu.memory_space<vmem>>, vector<64x512xf32>,
    %cst_5 = arith.constant 0.000000e+00 : f32
    %4 = vector.broadcast %cst_5 : f32 to vector<8x128xf32>
    %cst_6 = arith.constant 0.000000e+00 : f32
    %5 = vector.broadcast %cst_6 : f32 to vector<8x128xf32>
    %c0_i32 = arith.constant 0 : i32
    %c8_i32 = arith.constant 8 : i32
    %6 = arith.muli %c0_i32, %c8_i32 : i32
    %7 = tpu.assume_multiple %6, 8 : i32
    %8 = arith.index_cast %7 : i32 to index
    %c0_7 = arith.constant 0 : index
    %9 = vector.load %arg8[%8, %c0_7] : memref<64x512xf32, #tpu.memory_space<vmem>>, vector<8x512xf32>
    %c0_8 = arith.constant 0 : index
    %c0_9 = arith.constant 0 : index
    %10 = vector.load %arg2[%c0_8, %c0_9] : memref<128x512xf32, #tpu.memory_space<vmem>>, vector<128x512xf32>
    %cst_10 = arith.constant dense<0.000000e+00> : vector<8x512xf32>
    %11 = tpu.matmul %4, %10, %cst_10 {dimension_numbers = #tpu.dot_dimension_numbers<[1], [0], [0], [1], [0, 0, 1, 1], [], []>} : vector<8x128xf32>, vector<128x512xf32>, vector<8x512xf32> -> vector<8x512xf32>
    %12 = arith.addf %9, %11 : vector<8x512xf32>
    %13 = vector.extract_strided_slice %12 {offsets = [0, 0], sizes = [8, 128], strides = [1, 1]} : vector<8x512xf32> to vector<8x128xf32>
    %cst_11 = arith.constant 5.000000e-01 : f32
    %14 = vector.broadcast %cst_11 : f32 to vector<8x128xf32>
    %15 = arith.mulf %14, %13 : vector<8x128xf32>
    %16 = math.tanh %15 : vector<8x128xf32>
    %cst_12 = arith.constant 5.000000e-01 : f32
    %17 = vector.broadcast %cst_12 : f32 to vector<8x128xf32>
    %18 = arith.mulf %17, %16 : vector<8x128xf32>
    %cst_13 = arith.constant 5.000000e-01 : f32
    %19 = vector.broadcast %cst_13 : f32 to vector<8x128xf32>
    %20 = arith.addf %18, %19 : vector<8x128xf32>
    %21 = vector.extract_strided_slice %12 {offsets = [0, 128], sizes = [8, 128], strides = [1, 1]} : vector<8x512xf32> to vector<8x128xf32>
    %cst_14 = arith.constant 5.000000e-01 : f32
    %22 = vector.broadcast %cst_14 : f32 to vector<8x128xf32>
    %23 = arith.mulf %22, %21 : vector<8x128xf32>
    %24 = math.tanh %23 : vector<8x128xf32>
    %cst_15 = arith.constant 5.000000e-01 : f32
    %25 = vector.broadcast %cst_15 : f32 to vector<8x128xf32>
    %26 = arith.mulf %25, %24 : vector<8x128xf32>
    %cst_16 = arith.constant 5.000000e-01 : f32
    %27 = vector.broadcast %cst_16 : f32 to vector<8x128xf32>
    %28 = arith.addf %26, %27 : vector<8x128xf32>
    %29 = vector.extract_strided_slice %12 {offsets = [0, 256], sizes = [8, 128], strides = [1, 1]} : vector<8x512xf32> to vector<8x128xf32>
    %30 = math.tanh %29 : vector<8x128xf32>
    %31 = vector.extract_strided_slice %12 {offsets = [0, 384], sizes = [8, 128], strides = [1, 1]} : vector<8x512xf32> to vector<8x128xf32>
    %cst_17 = arith.constant 5.000000e-01 : f32
    %32 = vector.broadcast %cst_17 : f32 to vector<8x128xf32>
    %33 = arith.mulf %32, %31 : vector<8x128xf32>
    %34 = math.tanh %33 : vector<8x128xf32>
    %cst_18 = arith.constant 5.000000e-01 : f32
    %35 = vector.broadcast %cst_18 : f32 to vector<8x128xf32>
    %36 = arith.mulf %35, %34 : vector<8x128xf32>
    %cst_19 = arith.constant 5.000000e-01 : f32
    %37 = vector.broadcast %cst_19 : f32 to vector<8x128xf32>
    %38 = arith.addf %36, %37 : vector<8x128xf32>
    %39 = arith.mulf %28, %5 : vector<8x128xf32>
    %40 = arith.mulf %20, %30 : vector<8x128xf32>
    %41 = arith.addf %39, %40 : vector<8x128xf32>
    %42 = math.tanh %41 : vector<8x128xf32>
    %43 = arith.mulf %38, %42 : vector<8x128xf32>
    %c1_i32 = arith.constant 1 : i32
    %c8_i32_20 = arith.constant 8 : i32
    %44 = arith.muli %c1_i32, %c8_i32_20 : i32
    %45 = tpu.assume_multiple %44, 8 : i32
    %46 = arith.index_cast %45 : i32 to index
    %c0_21 = arith.constant 0 : index
    %47 = vector.load %arg8[%46, %c0_21] : memref<64x512xf32, #tpu.memory_space<vmem>>, vector<8x512xf32>
    %c0_22 = arith.constant 0 : index
    %c0_23 = arith.constant 0 : index
    %48 = vector.load %arg2[%c0_22, %c0_23] : memref<128x512xf32, #tpu.memory_space<vmem>>, vector<128x512xf32>
    %cst_24 = arith.constant dense<0.000000e+00> : vector<8x512xf32>
    %49 = tpu.matmul %43, %48, %cst_24 {dimension_numbers = #tpu.dot_dimension_numbers<[1], [0], [0], [1], [0, 0, 1, 1], [], []>} : vector<8x128xf32>, vector<128x512xf32>, vector<8x512xf32> -> vector<8x512xf32>
    %50 = arith.addf %47, %49 : vector<8x512xf32>
    %51 = vector.extract_strided_slice %50 {offsets = [0, 0], sizes = [8, 128], strides = [1, 1]} : vector<8x512xf32> to vector<8x128xf32>
    %cst_25 = arith.constant 5.000000e-01 : f32
    %52 = vector.broadcast %cst_25 : f32 to vector<8x128xf32>
    %53 = arith.mulf %52, %51 : vector<8x128xf32>
    %54 = math.tanh %53 : vector<8x128xf32>
    %cst_26 = arith.constant 5.000000e-01 : f32
    %55 = vector.broadcast %cst_26 : f32 to vector<8x128xf32>
    %56 = arith.mulf %55, %54 : vector<8x128xf32>
    %cst_27 = arith.constant 5.000000e-01 : f32
    %57 = vector.broadcast %cst_27 : f32 to vector<8x128xf32>
    %58 = arith.addf %56, %57 : vector<8x128xf32>
    %59 = vector.extract_strided_slice %50 {offsets = [0, 128], sizes = [8, 128], strides = [1, 1]} : vector<8x512xf32> to vector<8x128xf32>
    %cst_28 = arith.constant 5.000000e-01 : f32
    %60 = vector.broadcast %cst_28 : f32 to vector<8x128xf32>
    %61 = arith.mulf %60, %59 : vector<8x128xf32>
    %62 = math.tanh %61 : vector<8x128xf32>
    %cst_29 = arith.constant 5.000000e-01 : f32
    %63 = vector.broadcast %cst_29 : f32 to vector<8x128xf32>
    %64 = arith.mulf %63, %62 : vector<8x128xf32>
    %cst_30 = arith.constant 5.000000e-01 : f32
    %65 = vector.broadcast %cst_30 : f32 to vector<8x128xf32>
    %66 = arith.addf %64, %65 : vector<8x128xf32>
    %67 = vector.extract_strided_slice %50 {offsets = [0, 256], sizes = [8, 128], strides = [1, 1]} : vector<8x512xf32> to vector<8x128xf32>
    %68 = math.tanh %67 : vector<8x128xf32>
    %69 = vector.extract_strided_slice %50 {offsets = [0, 384], sizes = [8, 128], strides = [1, 1]} : vector<8x512xf32> to vector<8x128xf32>
    %cst_31 = arith.constant 5.000000e-01 : f32
    %70 = vector.broadcast %cst_31 : f32 to vector<8x128xf32>
    %71 = arith.mulf %70, %69 : vector<8x128xf32>
    %72 = math.tanh %71 : vector<8x128xf32>
    %cst_32 = arith.constant 5.000000e-01 : f32
    %73 = vector.broadcast %cst_32 : f32 to vector<8x128xf32>
    %74 = arith.mulf %73, %72 : vector<8x128xf32>
    %cst_33 = arith.constant 5.000000e-01 : f32
    %75 = vector.broadcast %cst_33 : f32 to vector<8x128xf32>
    %76 = arith.addf %74, %75 : vector<8x128xf32>
    %77 = arith.mulf %66, %41 : vector<8x128xf32>
    %78 = arith.mulf %58, %68 : vector<8x128xf32>
    %79 = arith.addf %77, %78 : vector<8x128xf32>
    %80 = math.tanh %79 : vector<8x128xf32>
    %81 = arith.mulf %76, %80 : vector<8x128xf32>
    %c2_i32 = arith.constant 2 : i32
    %c8_i32_34 = arith.constant 8 : i32
    %82 = arith.muli %c2_i32, %c8_i32_34 : i32
    %83 = tpu.assume_multiple %82, 8 : i32
    %84 = arith.index_cast %83 : i32 to index
    %c0_35 = arith.constant 0 : index
    %85 = vector.load %arg8[%84, %c0_35] : memref<64x512xf32, #tpu.memory_space<vmem>>, vector<8x512xf32>
    %c0_36 = arith.constant 0 : index
    %c0_37 = arith.constant 0 : index
    %86 = vector.load %arg2[%c0_36, %c0_37] : memref<128x512xf32, #tpu.memory_space<vmem>>, vector<128x512xf32>
    %cst_38 = arith.constant dense<0.000000e+00> : vector<8x512xf32>
    %87 = tpu.matmul %81, %86, %cst_38 {dimension_numbers = #tpu.dot_dimension_numbers<[1], [0], [0], [1], [0, 0, 1, 1], [], []>} : vector<8x128xf32>, vector<128x512xf32>, vector<8x512xf32> -> vector<8x512xf32>
    %88 = arith.addf %85, %87 : vector<8x512xf32>
    %89 = vector.extract_strided_slice %88 {offsets = [0, 0], sizes = [8, 128], strides = [1, 1]} : vector<8x512xf32> to vector<8x128xf32>
    %cst_39 = arith.constant 5.000000e-01 : f32
    %90 = vector.broadcast %cst_39 : f32 to vector<8x128xf32>
    %91 = arith.mulf %90, %89 : vector<8x128xf32>
    %92 = math.tanh %91 : vector<8x128xf32>
    %cst_40 = arith.constant 5.000000e-01 : f32
    %93 = vector.broadcast %cst_40 : f32 to vector<8x128xf32>
    %94 = arith.mulf %93, %92 : vector<8x128xf32>
    %cst_41 = arith.constant 5.000000e-01 : f32
    %95 = vector.broadcast %cst_41 : f32 to vector<8x128xf32>
    %96 = arith.addf %94, %95 : vector<8x128xf32>
    %97 = vector.extract_strided_slice %88 {offsets = [0, 128], sizes = [8, 128], strides = [1, 1]} : vector<8x512xf32> to vector<8x128xf32>
    %cst_42 = arith.constant 5.000000e-01 : f32
    %98 = vector.broadcast %cst_42 : f32 to vector<8x128xf32>
    %99 = arith.mulf %98, %97 : vector<8x128xf32>
    %100 = math.tanh %99 : vector<8x128xf32>
    %cst_43 = arith.constant 5.000000e-01 : f32
    %101 = vector.broadcast %cst_43 : f32 to vector<8x128xf32>
    %102 = arith.mulf %101, %100 : vector<8x128xf32>
    %cst_44 = arith.constant 5.000000e-01 : f32
    %103 = vector.broadcast %cst_44 : f32 to vector<8x128xf32>
    %104 = arith.addf %102, %103 : vector<8x128xf32>
    %105 = vector.extract_strided_slice %88 {offsets = [0, 256], sizes = [8, 128], strides = [1, 1]} : vector<8x512xf32> to vector<8x128xf32>
    %106 = math.tanh %105 : vector<8x128xf32>
    %107 = vector.extract_strided_slice %88 {offsets = [0, 384], sizes = [8, 128], strides = [1, 1]} : vector<8x512xf32> to vector<8x128xf32>
    %cst_45 = arith.constant 5.000000e-01 : f32
    %108 = vector.broadcast %cst_45 : f32 to vector<8x128xf32>
    %109 = arith.mulf %108, %107 : vector<8x128xf32>
    %110 = math.tanh %109 : vector<8x128xf32>
    %cst_46 = arith.constant 5.000000e-01 : f32
    %111 = vector.broadcast %cst_46 : f32 to vector<8x128xf32>
    %112 = arith.mulf %111, %110 : vector<8x128xf32>
    %cst_47 = arith.constant 5.000000e-01 : f32
    %113 = vector.broadcast %cst_47 : f32 to vector<8x128xf32>
    %114 = arith.addf %112, %113 : vector<8x128xf32>
    %115 = arith.mulf %104, %79 : vector<8x128xf32>
    %116 = arith.mulf %96, %106 : vector<8x128xf32>
    %117 = arith.addf %115, %116 : vector<8x128xf32>
    %118 = math.tanh %117 : vector<8x128xf32>
    %119 = arith.mulf %114, %118 : vector<8x128xf32>
    %c3_i32 = arith.constant 3 : i32
    %c8_i32_48 = arith.constant 8 : i32
    %120 = arith.muli %c3_i32, %c8_i32_48 : i32
    %121 = tpu.assume_multiple %120, 8 : i32
    %122 = arith.index_cast %121 : i32 to index
    %c0_49 = arith.constant 0 : index
    %123 = vector.load %arg8[%122, %c0_49] : memref<64x512xf32, #tpu.memory_space<vmem>>, vector<8x512xf32>
    %c0_50 = arith.constant 0 : index
    %c0_51 = arith.constant 0 : index
    %124 = vector.load %arg2[%c0_50, %c0_51] : memref<128x512xf32, #tpu.memory_space<vmem>>, vector<128x512xf32>
    %cst_52 = arith.constant dense<0.000000e+00> : vector<8x512xf32>
    %125 = tpu.matmul %119, %124, %cst_52 {dimension_numbers = #tpu.dot_dimension_numbers<[1], [0], [0], [1], [0, 0, 1, 1], [], []>} : vector<8x128xf32>, vector<128x512xf32>, vector<8x512xf32> -> vector<8x512xf32>
    %126 = arith.addf %123, %125 : vector<8x512xf32>
    %127 = vector.extract_strided_slice %126 {offsets = [0, 0], sizes = [8, 128], strides = [1, 1]} : vector<8x512xf32> to vector<8x128xf32>
    %cst_53 = arith.constant 5.000000e-01 : f32
    %128 = vector.broadcast %cst_53 : f32 to vector<8x128xf32>
    %129 = arith.mulf %128, %127 : vector<8x128xf32>
    %130 = math.tanh %129 : vector<8x128xf32>
    %cst_54 = arith.constant 5.000000e-01 : f32
    %131 = vector.broadcast %cst_54 : f32 to vector<8x128xf32>
    %132 = arith.mulf %131, %130 : vector<8x128xf32>
    %cst_55 = arith.constant 5.000000e-01 : f32
    %133 = vector.broadcast %cst_55 : f32 to vector<8x128xf32>
    %134 = arith.addf %132, %133 : vector<8x128xf32>
    %135 = vector.extract_strided_slice %126 {offsets = [0, 128], sizes = [8, 128], strides = [1, 1]} : vector<8x512xf32> to vector<8x128xf32>
    %cst_56 = arith.constant 5.000000e-01 : f32
    %136 = vector.broadcast %cst_56 : f32 to vector<8x128xf32>
    %137 = arith.mulf %136, %135 : vector<8x128xf32>
    %138 = math.tanh %137 : vector<8x128xf32>
    %cst_57 = arith.constant 5.000000e-01 : f32
    %139 = vector.broadcast %cst_57 : f32 to vector<8x128xf32>
    %140 = arith.mulf %139, %138 : vector<8x128xf32>
    %cst_58 = arith.constant 5.000000e-01 : f32
    %141 = vector.broadcast %cst_58 : f32 to vector<8x128xf32>
    %142 = arith.addf %140, %141 : vector<8x128xf32>
    %143 = vector.extract_strided_slice %126 {offsets = [0, 256], sizes = [8, 128], strides = [1, 1]} : vector<8x512xf32> to vector<8x128xf32>
    %144 = math.tanh %143 : vector<8x128xf32>
    %145 = vector.extract_strided_slice %126 {offsets = [0, 384], sizes = [8, 128], strides = [1, 1]} : vector<8x512xf32> to vector<8x128xf32>
    %cst_59 = arith.constant 5.000000e-01 : f32
    %146 = vector.broadcast %cst_59 : f32 to vector<8x128xf32>
    %147 = arith.mulf %146, %145 : vector<8x128xf32>
    %148 = math.tanh %147 : vector<8x128xf32>
    %cst_60 = arith.constant 5.000000e-01 : f32
    %149 = vector.broadcast %cst_60 : f32 to vector<8x128xf32>
    %150 = arith.mulf %149, %148 : vector<8x128xf32>
    %cst_61 = arith.constant 5.000000e-01 : f32
    %151 = vector.broadcast %cst_61 : f32 to vector<8x128xf32>
    %152 = arith.addf %150, %151 : vector<8x128xf32>
    %153 = arith.mulf %142, %117 : vector<8x128xf32>
    %154 = arith.mulf %134, %144 : vector<8x128xf32>
    %155 = arith.addf %153, %154 : vector<8x128xf32>
    %156 = math.tanh %155 : vector<8x128xf32>
    %157 = arith.mulf %152, %156 : vector<8x128xf32>
    %c4_i32 = arith.constant 4 : i32
    %c8_i32_62 = arith.constant 8 : i32
    %158 = arith.muli %c4_i32, %c8_i32_62 : i32
    %159 = tpu.assume_multiple %158, 8 : i32
    %160 = arith.index_cast %159 : i32 to index
    %c0_63 = arith.constant 0 : index
    %161 = vector.load %arg8[%160, %c0_63] : memref<64x512xf32, #tpu.memory_space<vmem>>, vector<8x512xf32>
    %c0_64 = arith.constant 0 : index
    %c0_65 = arith.constant 0 : index
    %162 = vector.load %arg2[%c0_64, %c0_65] : memref<128x512xf32, #tpu.memory_space<vmem>>, vector<128x512xf32>
    %cst_66 = arith.constant dense<0.000000e+00> : vector<8x512xf32>
    %163 = tpu.matmul %157, %162, %cst_66 {dimension_numbers = #tpu.dot_dimension_numbers<[1], [0], [0], [1], [0, 0, 1, 1], [], []>} : vector<8x128xf32>, vector<128x512xf32>, vector<8x512xf32> -> vector<8x512xf32>
    %164 = arith.addf %161, %163 : vector<8x512xf32>
    %165 = vector.extract_strided_slice %164 {offsets = [0, 0], sizes = [8, 128], strides = [1, 1]} : vector<8x512xf32> to vector<8x128xf32>
    %cst_67 = arith.constant 5.000000e-01 : f32
    %166 = vector.broadcast %cst_67 : f32 to vector<8x128xf32>
    %167 = arith.mulf %166, %165 : vector<8x128xf32>
    %168 = math.tanh %167 : vector<8x128xf32>
    %cst_68 = arith.constant 5.000000e-01 : f32
    %169 = vector.broadcast %cst_68 : f32 to vector<8x128xf32>
    %170 = arith.mulf %169, %168 : vector<8x128xf32>
    %cst_69 = arith.constant 5.000000e-01 : f32
    %171 = vector.broadcast %cst_69 : f32 to vector<8x128xf32>
    %172 = arith.addf %170, %171 : vector<8x128xf32>
    %173 = vector.extract_strided_slice %164 {offsets = [0, 128], sizes = [8, 128], strides = [1, 1]} : vector<8x512xf32> to vector<8x128xf32>
    %cst_70 = arith.constant 5.000000e-01 : f32
    %174 = vector.broadcast %cst_70 : f32 to vector<8x128xf32>
    %175 = arith.mulf %174, %173 : vector<8x128xf32>
    %176 = math.tanh %175 : vector<8x128xf32>
    %cst_71 = arith.constant 5.000000e-01 : f32
    %177 = vector.broadcast %cst_71 : f32 to vector<8x128xf32>
    %178 = arith.mulf %177, %176 : vector<8x128xf32>
    %cst_72 = arith.constant 5.000000e-01 : f32
    %179 = vector.broadcast %cst_72 : f32 to vector<8x128xf32>
    %180 = arith.addf %178, %179 : vector<8x128xf32>
    %181 = vector.extract_strided_slice %164 {offsets = [0, 256], sizes = [8, 128], strides = [1, 1]} : vector<8x512xf32> to vector<8x128xf32>
    %182 = math.tanh %181 : vector<8x128xf32>
    %183 = vector.extract_strided_slice %164 {offsets = [0, 384], sizes = [8, 128], strides = [1, 1]} : vector<8x512xf32> to vector<8x128xf32>
    %cst_73 = arith.constant 5.000000e-01 : f32
    %184 = vector.broadcast %cst_73 : f32 to vector<8x128xf32>
    %185 = arith.mulf %184, %183 : vector<8x128xf32>
    %186 = math.tanh %185 : vector<8x128xf32>
    %cst_74 = arith.constant 5.000000e-01 : f32
    %187 = vector.broadcast %cst_74 : f32 to vector<8x128xf32>
    %188 = arith.mulf %187, %186 : vector<8x128xf32>
    %cst_75 = arith.constant 5.000000e-01 : f32
    %189 = vector.broadcast %cst_75 : f32 to vector<8x128xf32>
    %190 = arith.addf %188, %189 : vector<8x128xf32>
    %191 = arith.mulf %180, %155 : vector<8x128xf32>
    %192 = arith.mulf %172, %182 : vector<8x128xf32>
    %193 = arith.addf %191, %192 : vector<8x128xf32>
    %194 = math.tanh %193 : vector<8x128xf32>
    %195 = arith.mulf %190, %194 : vector<8x128xf32>
    %c5_i32 = arith.constant 5 : i32
    %c8_i32_76 = arith.constant 8 : i32
    %196 = arith.muli %c5_i32, %c8_i32_76 : i32
    %197 = tpu.assume_multiple %196, 8 : i32
    %198 = arith.index_cast %197 : i32 to index
    %c0_77 = arith.constant 0 : index
    %199 = vector.load %arg8[%198, %c0_77] : memref<64x512xf32, #tpu.memory_space<vmem>>, vector<8x512xf32>
    %c0_78 = arith.constant 0 : index
    %c0_79 = arith.constant 0 : index
    %200 = vector.load %arg2[%c0_78, %c0_79] : memref<128x512xf32, #tpu.memory_space<vmem>>, vector<128x512xf32>
    %cst_80 = arith.constant dense<0.000000e+00> : vector<8x512xf32>
    %201 = tpu.matmul %195, %200, %cst_80 {dimension_numbers = #tpu.dot_dimension_numbers<[1], [0], [0], [1], [0, 0, 1, 1], [], []>} : vector<8x128xf32>, vector<128x512xf32>, vector<8x512xf32> -> vector<8x512xf32>
    %202 = arith.addf %199, %201 : vector<8x512xf32>
    %203 = vector.extract_strided_slice %202 {offsets = [0, 0], sizes = [8, 128], strides = [1, 1]} : vector<8x512xf32> to vector<8x128xf32>
    %cst_81 = arith.constant 5.000000e-01 : f32
    %204 = vector.broadcast %cst_81 : f32 to vector<8x128xf32>
    %205 = arith.mulf %204, %203 : vector<8x128xf32>
    %206 = math.tanh %205 : vector<8x128xf32>
    %cst_82 = arith.constant 5.000000e-01 : f32
    %207 = vector.broadcast %cst_82 : f32 to vector<8x128xf32>
    %208 = arith.mulf %207, %206 : vector<8x128xf32>
    %cst_83 = arith.constant 5.000000e-01 : f32
    %209 = vector.broadcast %cst_83 : f32 to vector<8x128xf32>
    %210 = arith.addf %208, %209 : vector<8x128xf32>
    %211 = vector.extract_strided_slice %202 {offsets = [0, 128], sizes = [8, 128], strides = [1, 1]} : vector<8x512xf32> to vector<8x128xf32>
    %cst_84 = arith.constant 5.000000e-01 : f32
    %212 = vector.broadcast %cst_84 : f32 to vector<8x128xf32>
    %213 = arith.mulf %212, %211 : vector<8x128xf32>
    %214 = math.tanh %213 : vector<8x128xf32>
    %cst_85 = arith.constant 5.000000e-01 : f32
    %215 = vector.broadcast %cst_85 : f32 to vector<8x128xf32>
    %216 = arith.mulf %215, %214 : vector<8x128xf32>
    %cst_86 = arith.constant 5.000000e-01 : f32
    %217 = vector.broadcast %cst_86 : f32 to vector<8x128xf32>
    %218 = arith.addf %216, %217 : vector<8x128xf32>
    %219 = vector.extract_strided_slice %202 {offsets = [0, 256], sizes = [8, 128], strides = [1, 1]} : vector<8x512xf32> to vector<8x128xf32>
    %220 = math.tanh %219 : vector<8x128xf32>
    %221 = vector.extract_strided_slice %202 {offsets = [0, 384], sizes = [8, 128], strides = [1, 1]} : vector<8x512xf32> to vector<8x128xf32>
    %cst_87 = arith.constant 5.000000e-01 : f32
    %222 = vector.broadcast %cst_87 : f32 to vector<8x128xf32>
    %223 = arith.mulf %222, %221 : vector<8x128xf32>
    %224 = math.tanh %223 : vector<8x128xf32>
    %cst_88 = arith.constant 5.000000e-01 : f32
    %225 = vector.broadcast %cst_88 : f32 to vector<8x128xf32>
    %226 = arith.mulf %225, %224 : vector<8x128xf32>
    %cst_89 = arith.constant 5.000000e-01 : f32
    %227 = vector.broadcast %cst_89 : f32 to vector<8x128xf32>
    %228 = arith.addf %226, %227 : vector<8x128xf32>
    %229 = arith.mulf %218, %193 : vector<8x128xf32>
    %230 = arith.mulf %210, %220 : vector<8x128xf32>
    %231 = arith.addf %229, %230 : vector<8x128xf32>
    %232 = math.tanh %231 : vector<8x128xf32>
    %233 = arith.mulf %228, %232 : vector<8x128xf32>
    %c6_i32 = arith.constant 6 : i32
    %c8_i32_90 = arith.constant 8 : i32
    %234 = arith.muli %c6_i32, %c8_i32_90 : i32
    %235 = tpu.assume_multiple %234, 8 : i32
    %236 = arith.index_cast %235 : i32 to index
    %c0_91 = arith.constant 0 : index
    %237 = vector.load %arg8[%236, %c0_91] : memref<64x512xf32, #tpu.memory_space<vmem>>, vector<8x512xf32>
    %c0_92 = arith.constant 0 : index
    %c0_93 = arith.constant 0 : index
    %238 = vector.load %arg2[%c0_92, %c0_93] : memref<128x512xf32, #tpu.memory_space<vmem>>, vector<128x512xf32>
    %cst_94 = arith.constant dense<0.000000e+00> : vector<8x512xf32>
    %239 = tpu.matmul %233, %238, %cst_94 {dimension_numbers = #tpu.dot_dimension_numbers<[1], [0], [0], [1], [0, 0, 1, 1], [], []>} : vector<8x128xf32>, vector<128x512xf32>, vector<8x512xf32> -> vector<8x512xf32>
    %240 = arith.addf %237, %239 : vector<8x512xf32>
    %241 = vector.extract_strided_slice %240 {offsets = [0, 0], sizes = [8, 128], strides = [1, 1]} : vector<8x512xf32> to vector<8x128xf32>
    %cst_95 = arith.constant 5.000000e-01 : f32
    %242 = vector.broadcast %cst_95 : f32 to vector<8x128xf32>
    %243 = arith.mulf %242, %241 : vector<8x128xf32>
    %244 = math.tanh %243 : vector<8x128xf32>
    %cst_96 = arith.constant 5.000000e-01 : f32
    %245 = vector.broadcast %cst_96 : f32 to vector<8x128xf32>
    %246 = arith.mulf %245, %244 : vector<8x128xf32>
    %cst_97 = arith.constant 5.000000e-01 : f32
    %247 = vector.broadcast %cst_97 : f32 to vector<8x128xf32>
    %248 = arith.addf %246, %247 : vector<8x128xf32>
    %249 = vector.extract_strided_slice %240 {offsets = [0, 128], sizes = [8, 128], strides = [1, 1]} : vector<8x512xf32> to vector<8x128xf32>
    %cst_98 = arith.constant 5.000000e-01 : f32
    %250 = vector.broadcast %cst_98 : f32 to vector<8x128xf32>
    %251 = arith.mulf %250, %249 : vector<8x128xf32>
    %252 = math.tanh %251 : vector<8x128xf32>
    %cst_99 = arith.constant 5.000000e-01 : f32
    %253 = vector.broadcast %cst_99 : f32 to vector<8x128xf32>
    %254 = arith.mulf %253, %252 : vector<8x128xf32>
    %cst_100 = arith.constant 5.000000e-01 : f32
    %255 = vector.broadcast %cst_100 : f32 to vector<8x128xf32>
    %256 = arith.addf %254, %255 : vector<8x128xf32>
    %257 = vector.extract_strided_slice %240 {offsets = [0, 256], sizes = [8, 128], strides = [1, 1]} : vector<8x512xf32> to vector<8x128xf32>
    %258 = math.tanh %257 : vector<8x128xf32>
    %259 = vector.extract_strided_slice %240 {offsets = [0, 384], sizes = [8, 128], strides = [1, 1]} : vector<8x512xf32> to vector<8x128xf32>
    %cst_101 = arith.constant 5.000000e-01 : f32
    %260 = vector.broadcast %cst_101 : f32 to vector<8x128xf32>
    %261 = arith.mulf %260, %259 : vector<8x128xf32>
    %262 = math.tanh %261 : vector<8x128xf32>
    %cst_102 = arith.constant 5.000000e-01 : f32
    %263 = vector.broadcast %cst_102 : f32 to vector<8x128xf32>
    %264 = arith.mulf %263, %262 : vector<8x128xf32>
    %cst_103 = arith.constant 5.000000e-01 : f32
    %265 = vector.broadcast %cst_103 : f32 to vector<8x128xf32>
    %266 = arith.addf %264, %265 : vector<8x128xf32>
    %267 = arith.mulf %256, %231 : vector<8x128xf32>
    %268 = arith.mulf %248, %258 : vector<8x128xf32>
    %269 = arith.addf %267, %268 : vector<8x128xf32>
    %270 = math.tanh %269 : vector<8x128xf32>
    %271 = arith.mulf %266, %270 : vector<8x128xf32>
    %c7_i32 = arith.constant 7 : i32
    %c8_i32_104 = arith.constant 8 : i32
    %272 = arith.muli %c7_i32, %c8_i32_104 : i32
    %273 = tpu.assume_multiple %272, 8 : i32
    %274 = arith.index_cast %273 : i32 to index
    %c0_105 = arith.constant 0 : index
    %275 = vector.load %arg8[%274, %c0_105] : memref<64x512xf32, #tpu.memory_space<vmem>>, vector<8x512xf32>
    %c0_106 = arith.constant 0 : index
    %c0_107 = arith.constant 0 : index
    %276 = vector.load %arg2[%c0_106, %c0_107] : memref<128x512xf32, #tpu.memory_space<vmem>>, vector<128x512xf32>
    %cst_108 = arith.constant dense<0.000000e+00> : vector<8x512xf32>
    %277 = tpu.matmul %271, %276, %cst_108 {dimension_numbers = #tpu.dot_dimension_numbers<[1], [0], [0], [1], [0, 0, 1, 1], [], []>} : vector<8x128xf32>, vector<128x512xf32>, vector<8x512xf32> -> vector<8x512xf32>
    %278 = arith.addf %275, %277 : vector<8x512xf32>
    %279 = vector.extract_strided_slice %278 {offsets = [0, 0], sizes = [8, 128], strides = [1, 1]} : vector<8x512xf32> to vector<8x128xf32>
    %cst_109 = arith.constant 5.000000e-01 : f32
    %280 = vector.broadcast %cst_109 : f32 to vector<8x128xf32>
    %281 = arith.mulf %280, %279 : vector<8x128xf32>
    %282 = math.tanh %281 : vector<8x128xf32>
    %cst_110 = arith.constant 5.000000e-01 : f32
    %283 = vector.broadcast %cst_110 : f32 to vector<8x128xf32>
    %284 = arith.mulf %283, %282 : vector<8x128xf32>
    %cst_111 = arith.constant 5.000000e-01 : f32
    %285 = vector.broadcast %cst_111 : f32 to vector<8x128xf32>
    %286 = arith.addf %284, %285 : vector<8x128xf32>
    %287 = vector.extract_strided_slice %278 {offsets = [0, 128], sizes = [8, 128], strides = [1, 1]} : vector<8x512xf32> to vector<8x128xf32>
    %cst_112 = arith.constant 5.000000e-01 : f32
    %288 = vector.broadcast %cst_112 : f32 to vector<8x128xf32>
    %289 = arith.mulf %288, %287 : vector<8x128xf32>
    %290 = math.tanh %289 : vector<8x128xf32>
    %cst_113 = arith.constant 5.000000e-01 : f32
    %291 = vector.broadcast %cst_113 : f32 to vector<8x128xf32>
    %292 = arith.mulf %291, %290 : vector<8x128xf32>
    %cst_114 = arith.constant 5.000000e-01 : f32
    %293 = vector.broadcast %cst_114 : f32 to vector<8x128xf32>
    %294 = arith.addf %292, %293 : vector<8x128xf32>
    %295 = vector.extract_strided_slice %278 {offsets = [0, 256], sizes = [8, 128], strides = [1, 1]} : vector<8x512xf32> to vector<8x128xf32>
    %296 = math.tanh %295 : vector<8x128xf32>
    %297 = vector.extract_strided_slice %278 {offsets = [0, 384], sizes = [8, 128], strides = [1, 1]} : vector<8x512xf32> to vector<8x128xf32>
    %cst_115 = arith.constant 5.000000e-01 : f32
    %298 = vector.broadcast %cst_115 : f32 to vector<8x128xf32>
    %299 = arith.mulf %298, %297 : vector<8x128xf32>
    %300 = math.tanh %299 : vector<8x128xf32>
    %cst_116 = arith.constant 5.000000e-01 : f32
    %301 = vector.broadcast %cst_116 : f32 to vector<8x128xf32>
    %302 = arith.mulf %301, %300 : vector<8x128xf32>
    %cst_117 = arith.constant 5.000000e-01 : f32
    %303 = vector.broadcast %cst_117 : f32 to vector<8x128xf32>
    %304 = arith.addf %302, %303 : vector<8x128xf32>
    %305 = arith.mulf %294, %269 : vector<8x128xf32>
    %306 = arith.mulf %286, %296 : vector<8x128xf32>
    %307 = arith.addf %305, %306 : vector<8x128xf32>
    %308 = math.tanh %307 : vector<8x128xf32>
    %309 = arith.mulf %304, %308 : vector<8x128xf32>
    %c8_i32_118 = arith.constant 8 : i32
    %c0_119 = arith.constant 0 : index
    %c0_120 = arith.constant 0 : index
    %310 = vector.load %arg3[%c0_119, %c0_120] : memref<128x128xf32, #tpu.memory_space<vmem>>, vector<128x128xf32>
    %cst_121 = arith.constant dense<0.000000e+00> : vector<8x128xf32>
    %311 = tpu.matmul %309, %310, %cst_121 {dimension_numbers = #tpu.dot_dimension_numbers<[1], [0], [0], [1], [0, 0, 1, 1], [], []>} : vector<8x128xf32>, vector<128x128xf32>, vector<8x128xf32> -> vector<8x128xf32>
    %c0_122 = arith.constant 0 : index
    %c0_123 = arith.constant 0 : index
    %312 = vector.load %arg4[%c0_122, %c0_123] : memref<1x128xf32, #tpu.memory_space<vmem>>, vector<1x128xf32>
    %313 = vector.broadcast %312 : vector<1x128xf32> to vector<8x128xf32>
    %314 = arith.addf %311, %313 : vector<8x128xf32>
    %cst_124 = arith.constant 0.000000e+00 : f32
    %315 = vector.broadcast %cst_124 : f32 to vector<8x128xf32>
    %316 = arith.maximumf %314, %315 : vector<8x128xf32>
    %c0_125 = arith.constant 0 : index
    %c0_126 = arith.constant 0 : index
    %317 = vector.load %arg5[%c0_125, %c0_126] : memref<128x128xf32, #tpu.memory_space<vmem>>, vector<128x128xf32>
    %cst_127 = arith.constant dense<0.000000e+00> : vector<8x128xf32>
    %318 = tpu.matmul %316, %317, %cst_127 {dimension_numbers = #tpu.dot_dimension_numbers<[1], [0], [0], [1], [0, 0, 1, 1], [], []>} : vector<8x128xf32>, vector<128x128xf32>, vector<8x128xf32> -> vector<8x128xf32>
    %c0_128 = arith.constant 0 : index
    %c0_129 = arith.constant 0 : index
    %319 = vector.load %arg6[%c0_128, %c0_129] : memref<1x128xf32, #tpu.memory_space<vmem>>, vector<1x128xf32>
    %320 = vector.broadcast %319 : vector<1x128xf32> to vector<8x128xf32>
    %321 = arith.addf %318, %320 : vector<8x128xf32>
    %c0_130 = arith.constant 0 : index
    %c0_131 = arith.constant 0 : index
    %322 = vector.load %arg7[%c0_130, %c0_131] : memref<8x128xf32, #tpu.memory_space<vmem>>, vector<8x128xf32>
    tpu.vector_store %arg7[%c0_130, %c0_131], %321 {strides = array<i32>} : memref<8x128xf32, #tpu.memory_space<vmem>>, vector<8x128xf32>,
    return
  }
}

</mosaic_0001>

<bundles_post_ra>
// kernel: harlstm_forward.1
= control target key start
LH: loop header
LB: loop body
LE: loop exit
PB: predicated region body
PF: predicated region fallthrough
CT: control target
= control target key end

     0   :  { %12 = vsyncpa [#allocation4], 0  ;;  %s2655_s0 = inlined_call_operand.vmem [shape: f32[64,8], index: 0, kind: input, shape index: {}]   ;;  %s2656_s1 = inlined_call_operand.vmem [shape: f32[8,512], index: 1, kind: input, shape index: {}]   ;;  %s2657_s2 = inlined_call_operand.hbm [shape: f32[128,512], index: 2, kind: input, shape index: {}]   ;;  %s2658_s3 = inlined_call_operand.vmem [shape: f32[128,128], index: 3, kind: input, shape index: {}]   ;;  %s2659_s4 = inlined_call_operand.vmem [shape: f32[1,128], index: 4, kind: input, shape index: {}]   ;;  %s2660_s5 = inlined_call_operand.hbm [shape: f32[128,128], index: 5, kind: input, shape index: {}]   ;;  %s2661_s6 = inlined_call_operand.vmem [shape: f32[1,128], index: 6, kind: input, shape index: {}]   ;;  %s2662_s7 = inlined_call_operand.vmem [shape: f32[8,128], index: 7, kind: output, shape index: {}]  }
   0x1   :  { %s22_s26 = sshll.u32 %s2657_s2, 4  ;;  %s23_s26 = int_to_ptr.hbm [resolvable:$true] %s22_s26 }
   0x2   :  { %13 = vsyncpa [#allocation6], 0  ;;  %s1561_s27 = smov [#allocation3]   ;;  %s39_s8 = sshll.u32 %s2660_s5, 4  ;;  %s40_s8 = int_to_ptr.hbm [resolvable:$true] %s39_s8 }
   0x3   :  { %s24_s28 = sshll.u32 %s1561_s27, 4  ;;  %s1562_s9 = smov 512   ;;  %s25_s28 = int_to_ptr.vmem [resolvable:$true] %s24_s28 }
   0x4   :  { %s1563_s10 = smov 32   ;;  %s1564_s11 = smov [#allocation5]  }
   0x5   :  { %30 = dma.hbm_to_vmem [thread:$0]  %s23_s26, 8192, %s25_s28, [#allocation4], %s1562_s9, %s1562_s9, %s1563_s10  }
   0x6   :  { %s41_s12 = sshll.u32 %s1564_s11, 4  ;;  %s1565_s13 = smov 128   ;;  %s42_s12 = int_to_ptr.vmem [resolvable:$true] %s41_s12 }
   0x7   :  { %s1566_s14 = smov 8  }
   0x8   :  { %47 = dma.hbm_to_vmem [thread:$0]  %s40_s8, 2048, %s42_s12, [#allocation6], %s1565_s13, %s1565_s13, %s1566_s14  }
   0x9   :  { %1557 = dma.done.wait [#allocation4], 8192  }
   0xa   :  { %1558 = vsyncadd [#allocation4], 4294959104 }
   0xb   :  { %1559 = dma.done.wait [#allocation6], 2048  }
   0xc   :  { %1560 = vsyncadd [#allocation6], 4294965248  ;;  %v66_v0 = vld [vmem:[%s2656_s1] sm:$0xff]  ;;  %v67_v1 = vld [vmem:[%s2656_s1 + $0x8] sm:$0xff]  ;;  %vm70_vm0 = vcmask 64512  }
   0xd   :  { %v1623_v2 = vld [vmem:[%s2655_s0] sm:$0xff]  ;;  %110 = vmatpush.msra.mxu0 %v66_v0  ;;  %1354 = vmatpush.msra.mxu2 %v66_v0  ;;  %v1628_v3 = vld [vmem:[%s2655_s0 + $0x30] sm:$0xff]  ;;  %v69_v5 = vld [vmem:[%s2656_s1 + $0x18] sm:$0xff] }
   0xe   :  { %151 = vmatpush.msra.mxu1 %v67_v1  ;;  %1355 = vmatpush.msra.mxu3 %v67_v1  ;;  %v68_v4 = vld [vmem:[%s2656_s1 + $0x10] sm:$0xff]  ;;  %v1642_v7 = vld [vmem:[#allocation3 + $0x1e0] sm:$0xff]  ;;  %v1648_v8 = vld [vmem:[#allocation3 + $0x1e8] sm:$0xff] }
   0xf   :  { %1322 = vmatmul.msk.f32.vlgmr.msra.gmra.mxu0 %vm70_vm0, %v1623_v2  ;;  %1328 = vmatmul.msk.f32.vlgmr.msra.gmra.mxu2 %vm70_vm0, %v1628_v3  ;;  %v1640_v6 = vld [vmem:[#allocation3 + $0x1f0] sm:$0xff]  ;;  %v1650_v9 = vld [vmem:[#allocation3 + $0x1c0] sm:$0xff]  ;;  %v1654_v11 = vld [vmem:[#allocation3 + $0x1f8] sm:$0xff] }
  0x10   :  { %1330 = vmatmul.msk.f32.vlgmr.msra.gmra.mxu1 %vm70_vm0, %v1623_v2  ;;  %1336 = vmatmul.msk.f32.vlgmr.msra.gmra.mxu3 %vm70_vm0, %v1628_v3  ;;  %v1652_v10 = vld [vmem:[#allocation3 + $0x1d0] sm:$0xff]  ;;  %v1658_v12 = vld [vmem:[#allocation3 + $0x1c8] sm:$0xff]  ;;  %v1661_v13 = vld [vmem:[#allocation3 + $0x1a0] sm:$0xff] }
  0x11   :  { %192 = vmatpush.msrb.mxu2 %v68_v4  ;;  %233 = vmatpush.msrb.mxu3 %v69_v5  ;;  %v1664_v14 = vld [vmem:[#allocation3 + $0x1b0] sm:$0xff]  ;;  %v1669_v15 = vld [vmem:[%s2655_s0 + $0x8] sm:$0xff]  ;;  %v1674_v16 = vld [vmem:[%s2655_s0 + $0x38] sm:$0xff] }
  0x12   :  { %362 = vmatpush.msrb.mxu0 %v1642_v7  ;;  %382 = vmatpush.msrb.mxu1 %v1648_v8  ;;  %v1678_v17 = vld [vmem:[#allocation3 + $0x1d8] sm:$0xff]  ;;  %v1683_v18 = vld [vmem:[#allocation3 + $0x1a8] sm:$0xff]  ;;  %v1685_v19 = vld [vmem:[#allocation3 + $0x180] sm:$0xff] }
  0x13   :  { %402 = vmatpush.msra.mxu2 %v1640_v6  ;;  %422 = vmatpush.msra.mxu3 %v1654_v11  ;;  %v1692_v20 = vld [vmem:[#allocation3 + $0x190] sm:$0xff]  ;;  %v1694_v21 = vld [vmem:[#allocation3 + $0x1b8] sm:$0xff]  ;;  %v1700_v22 = vld [vmem:[#allocation3 + $0x188] sm:$0xff] }
  0x14   :  { %363 = vmatpush.msrb.mxu0 %v1650_v9  ;;  %383 = vmatpush.msrb.mxu1 %v1658_v12  ;;  %v1702_v23 = vld [vmem:[#allocation3 + $0x160] sm:$0xff]  ;;  %v1706_v24 = vld [vmem:[#allocation3 + $0x170] sm:$0xff]  ;;  %v1708_v25 = vld [vmem:[#allocation3 + $0x198] sm:$0xff] }
  0x15   :  { %403 = vmatpush.msra.mxu2 %v1652_v10  ;;  %423 = vmatpush.msra.mxu3 %v1678_v17  ;;  %v1710_v26 = vld [vmem:[#allocation3 + $0x168] sm:$0xff]  ;;  %v1712_v27 = vld [vmem:[#allocation3 + $0x140] sm:$0xff]  ;;  %v1718_v28 = vld [vmem:[#allocation3 + $0x150] sm:$0xff] }
  0x16   :  { %364 = vmatpush.msrb.mxu0 %v1661_v13  ;;  %384 = vmatpush.msrb.mxu1 %v1683_v18  ;;  %v1720_v29 = vld [vmem:[#allocation3 + $0x178] sm:$0xff]  ;;  %v1725_v30 = vld [vmem:[%s2655_s0 + $0x10] sm:$0xff]  ;;  %v1731_v31 = vld [vmem:[#allocation3 + $0x148] sm:$0xff] }
  0x17   :  { %404 = vmatpush.msra.mxu2 %v1664_v14  ;;  %1323 = vmatmul.msk.f32.gmra.mxu0 %vm70_vm0, %v1669_v15  ;;  %v1733_v32 = vld [vmem:[#allocation3 + $0x120] sm:$0xff]  ;;  %v1741_v33 = vld [vmem:[#allocation3 + $0x130] sm:$0xff]  ;;  %v1743_v34 = vld [vmem:[#allocation3 + $0x158] sm:$0xff] }
  0x18   :  { %1329 = vmatmul.msk.f32.gmra.mxu2 %vm70_vm0, %v1674_v16  ;;  %1331 = vmatmul.msk.f32.gmra.mxu1 %vm70_vm0, %v1669_v15  ;;  %v1749_v35 = vld [vmem:[#allocation3 + $0x128] sm:$0xff]  ;;  %v1751_v36 = vld [vmem:[#allocation3 + $0x100] sm:$0xff]  ;;  %v1755_v37 = vld [vmem:[#allocation3 + $0x110] sm:$0xff] }
  0x19   :  { %1337 = vmatmul.msk.f32.gmra.mxu3 %vm70_vm0, %v1674_v16  ;;  %365 = vmatpush.msrb.mxu0 %v1685_v19  ;;  %v1757_v38 = vld [vmem:[#allocation3 + $0x138] sm:$0xff]  ;;  %v1759_v39 = vld [vmem:[#allocation3 + $0x108] sm:$0xff]  ;;  %v1761_v40 = vld [vmem:[#allocation3 + $0xe0] sm:$0xff] }
  0x1a   :  { %405 = vmatpush.msra.mxu2 %v1692_v20  ;;  %424 = vmatpush.msra.mxu3 %v1694_v21  ;;  %v1767_v41 = vld [vmem:[#allocation3 + $0xf0] sm:$0xff]  ;;  %v1769_v42 = vld [vmem:[#allocation3 + $0x118] sm:$0xff]  ;;  %v1780_v44 = vld [vmem:[#allocation3 + $0xe8] sm:$0xff] }
  0x1b   :  { %385 = vmatpush.msrb.mxu1 %v1700_v22  ;;  %366 = vmatpush.msrb.mxu0 %v1702_v23  ;;  %v1774_v43 = vld [vmem:[%s2655_s0 + $0x18] sm:$0xff]  ;;  %v1782_v45 = vld [vmem:[#allocation3 + $0xc0] sm:$0xff]  ;;  %v1790_v46 = vld [vmem:[#allocation3 + $0xd0] sm:$0xff] }
  0x1c   :  { %406 = vmatpush.msra.mxu2 %v1706_v24  ;;  %425 = vmatpush.msra.mxu3 %v1708_v25  ;;  %v1792_v47 = vld [vmem:[#allocation3 + $0xf8] sm:$0xff]  ;;  %v1798_v48 = vld [vmem:[#allocation3 + $0xc8] sm:$0xff]  ;;  %v1800_v49 = vld [vmem:[#allocation3 + $0xa0] sm:$0xff] }
  0x1d   :  { %386 = vmatpush.msrb.mxu1 %v1710_v26  ;;  %367 = vmatpush.msrb.mxu0 %v1712_v27  ;;  %v1804_v50 = vld [vmem:[#allocation3 + $0xb0] sm:$0xff]  ;;  %v1806_v51 = vld [vmem:[#allocation3 + $0xd8] sm:$0xff]  ;;  %v1808_v52 = vld [vmem:[#allocation3 + $0xa8] sm:$0xff] }
  0x1e   :  { %407 = vmatpush.msra.mxu2 %v1718_v28  ;;  %426 = vmatpush.msra.mxu3 %v1720_v29  ;;  %v1810_v53 = vld [vmem:[#allocation3 + $0x80] sm:$0xff]  ;;  %v1816_v54 = vld [vmem:[#allocation3 + $0x90] sm:$0xff]  ;;  %v1818_v55 = vld [vmem:[#allocation3 + $0xb8] sm:$0xff] }
  0x1f   :  { %1324 = vmatmul.msk.f32.gmra.mxu0 %vm70_vm0, %v1725_v30  ;;  %387 = vmatpush.msrb.mxu1 %v1731_v31  ;;  %2732 = vst [vmem:[#allocation9_spill] sm:$0xff] %v1810_v53  ;;  %v62_v56 = vld [vmem:[%s2655_s0 + $0x20] sm:$0xff]  ;;  %v1827_v57 = vld [vmem:[#allocation3 + $0x88] sm:$0xff]  ;;  %v1843_v61 = vld [vmem:[#allocation3 + $0x70] sm:$0xff] }
  0x20   :  { %1338 = vmatmul.msk.f32.vlgmr.msrb.gmra.mxu2 %vm70_vm0, %v1623_v2  ;;  %1332 = vmatmul.msk.f32.gmra.mxu1 %vm70_vm0, %v1725_v30  ;;  %2733 = vst [vmem:[#allocation10_spill] sm:$0xff] %v1816_v54  ;;  %v1829_v58 = vld [vmem:[#allocation3 + $0x60] sm:$0xff]  ;;  %v1836_v59 = vld [vmem:[#allocation3 + $0x68] sm:$0xff]  ;;  %v1845_v62 = vld [vmem:[#allocation3 + $0x98] sm:$0xff] }
  0x21   :  { %1346 = vmatmul.msk.f32.vlgmr.msrb.gmra.mxu3 %vm70_vm0, %v1623_v2  ;;  %368 = vmatpush.msrb.mxu0 %v1733_v32  ;;  %2734 = vst [vmem:[#allocation11_spill] sm:$0xff] %v1818_v55  ;;  %v1841_v60 = vld [vmem:[#allocation3 + $0x40] sm:$0xff]  ;;  %v1849_v63 = vld [vmem:[#allocation3 + $0x50] sm:$0xff]  ;;  %v1851_v0 = vld [vmem:[#allocation3 + $0x78] sm:$0xff] }
  0x22   :  { %408 = vmatpush.msra.mxu2 %v1741_v33  ;;  %427 = vmatpush.msra.mxu3 %v1743_v34  ;;  %2735 = vst [vmem:[#allocation12_spill] sm:$0xff] %v1827_v57  ;;  %v1853_v1 = vld [vmem:[#allocation3 + $0x48] sm:$0xff]  ;;  %v1855_v2 = vld [vmem:[#allocation3 + $0x20] sm:$0xff] }
  0x23   :  { %388 = vmatpush.msrb.mxu1 %v1749_v35  ;;  %369 = vmatpush.msrb.mxu0 %v1751_v36  ;;  %2736 = vst [vmem:[#allocation13_spill] sm:$0xff] %v1829_v58  ;;  %v63_v4 = vld [vmem:[%s2655_s0 + $0x28] sm:$0xff] }
  0x24   :  { %409 = vmatpush.msra.mxu2 %v1755_v37  ;;  %428 = vmatpush.msra.mxu3 %v1757_v38  ;;  %2737 = vst [vmem:[#allocation14_spill] sm:$0xff] %v1836_v59  ;;  %v1868_v5 = vld [vmem:[#allocation3 + $0x28] sm:$0xff] }
  0x25   :  { %389 = vmatpush.msrb.mxu1 %v1759_v39  ;;  %370 = vmatpush.msrb.mxu0 %v1761_v40  ;;  %2738 = vst [vmem:[#allocation15_spill] sm:$0xff] %v1841_v60 }
  0x26   :  { %410 = vmatpush.msra.mxu2 %v1767_v41  ;;  %429 = vmatpush.msra.mxu3 %v1769_v42  ;;  %2739 = vst [vmem:[#allocation16_spill] sm:$0xff] %v1843_v61 }
  0x27   :  { %1325 = vmatmul.msk.f32.gmra.mxu0 %vm70_vm0, %v1774_v43  ;;  %390 = vmatpush.msrb.mxu1 %v1780_v44  ;;  %2740 = vst [vmem:[#allocation17_spill] sm:$0xff] %v1845_v62 }
  0x28   :  { %1339 = vmatmul.msk.f32.gmra.mxu2 %vm70_vm0, %v1669_v15  ;;  %1333 = vmatmul.msk.f32.gmra.mxu1 %vm70_vm0, %v1774_v43  ;;  %2741 = vst [vmem:[#allocation18_spill] sm:$0xff] %v1849_v63 }
  0x29   :  { %1347 = vmatmul.msk.f32.gmra.mxu3 %vm70_vm0, %v1669_v15  ;;  %371 = vmatpush.msrb.mxu0 %v1782_v45  ;;  %2742 = vst [vmem:[#allocation19_spill] sm:$0xff] %v1851_v0  ;;  %v1870_v15 = vld [vmem:[#allocation3] sm:$0xff] }
  0x2a   :  { %411 = vmatpush.msra.mxu2 %v1790_v46  ;;  %430 = vmatpush.msra.mxu3 %v1792_v47  ;;  %2743 = vst [vmem:[#allocation20_spill] sm:$0xff] %v1853_v1 }
  0x2b   :  { %391 = vmatpush.msrb.mxu1 %v1798_v48  ;;  %372 = vmatpush.msrb.mxu0 %v1800_v49  ;;  %2744 = vst [vmem:[#allocation21_spill] sm:$0xff] %v1855_v2 }
  0x2c   :  { %412 = vmatpush.msra.mxu2 %v1804_v50  ;;  %431 = vmatpush.msra.mxu3 %v1806_v51  ;;  %2745 = vst [vmem:[#allocation22_spill] sm:$0xff] %v1868_v5 }
  0x2d   :  { %392 = vmatpush.msrb.mxu1 %v1808_v52  ;;  %373 = vmatpush.msrb.mxu0 %v1810_v53  ;;  %2746 = vst [vmem:[#allocation23_spill] sm:$0xff] %v1870_v15 }
  0x2e   :  { %413 = vmatpush.msra.mxu2 %v1816_v54  ;;  %432 = vmatpush.msra.mxu3 %v1818_v55 }
  0x2f   :  { %1326 = vmatmul.msk.f32.gmra.mxu0 %vm70_vm0, %v62_v56  ;;  %393 = vmatpush.msrb.mxu1 %v1827_v57 }
  0x30   :  { %1340 = vmatmul.msk.f32.gmra.mxu2 %vm70_vm0, %v1725_v30  ;;  %1334 = vmatmul.msk.f32.gmra.mxu1 %vm70_vm0, %v62_v56 }
  0x31   :  { %1348 = vmatmul.msk.f32.gmra.mxu3 %vm70_vm0, %v1725_v30  ;;  %374 = vmatpush.msrb.mxu0 %v1829_v58  ;;  %v1878_v30 = vld [vmem:[#allocation3 + $0x8] sm:$0xff] }
  0x32   :  { %414 = vmatpush.msra.mxu2 %v1843_v61  ;;  %433 = vmatpush.msra.mxu3 %v1845_v62  ;;  %2747 = vst [vmem:[#allocation24_spill] sm:$0xff] %v1878_v30 }
  0x33   :  { %394 = vmatpush.msrb.mxu1 %v1836_v59  ;;  %375 = vmatpush.msrb.mxu0 %v1841_v60  ;;  %v1888_v60 = vld [vmem:[#allocation3 + $0x38] sm:$0xff] }
  0x34   :  { %415 = vmatpush.msra.mxu2 %v1849_v63  ;;  %434 = vmatpush.msra.mxu3 %v1851_v0  ;;  %v1880_v63 = vld [vmem:[#allocation3 + $0x30] sm:$0xff]  ;;  %2751 = vst [vmem:[#allocation28_spill] sm:$0xff] %v1888_v60 }
  0x35   :  { %395 = vmatpush.msrb.mxu1 %v1853_v1  ;;  %376 = vmatpush.msrb.mxu0 %v1855_v2  ;;  %2748 = vst [vmem:[#allocation25_spill] sm:$0xff] %v1880_v63  ;;  %v1882_v1 = vld [vmem:[#allocation3 + $0x58] sm:$0xff]  ;;  %v1886_v2 = vld [vmem:[#allocation3 + $0x10] sm:$0xff] }
  0x36   :  { %2749 = vst [vmem:[#allocation26_spill] sm:$0xff] %v1882_v1  ;;  %416 = vmatpush.msra.mxu2 %v1880_v63  ;;  %435 = vmatpush.msra.mxu3 %v1882_v1 }
  0x37   :  { %1327 = vmatmul.msk.f32.gmra.mxu0 %vm70_vm0, %v63_v4  ;;  %396 = vmatpush.msrb.mxu1 %v1868_v5  ;;  %2750 = vst [vmem:[#allocation27_spill] sm:$0xff] %v1886_v2 }
  0x38   :  { %1341 = vmatmul.msk.f32.gmra.mxu2 %vm70_vm0, %v1774_v43  ;;  %1335 = vmatmul.msk.f32.gmra.mxu1 %vm70_vm0, %v63_v4 }
  0x39   :  { %1349 = vmatmul.msk.f32.gmra.mxu3 %vm70_vm0, %v1774_v43  ;;  %377 = vmatpush.msrb.mxu0 %v1870_v15  ;;  %v1893_v43 = vld [vmem:[#allocation3 + $0x18] sm:$0xff]  ;;  %v1567_v15 = vmov 0.0  }
  0x3a   :  { %397 = vmatpush.msrb.mxu1 %v1878_v30  ;;  %2752 = vst [vmem:[#allocation29_spill] sm:$0xff] %v1893_v43  ;;  %417 = vmatpush.msra.mxu2 %v1886_v2 }
  0x3b   :  { %471 = vmatpush.msra.mxu0 %v1642_v7  ;;  %436 = vmatpush.msra.mxu3 %v1888_v60 }
  0x3c   :  { %491 = vmatpush.msra.mxu1 %v1648_v8  ;;  %511 = vmatpush.msrb.mxu2 %v1640_v6 }
  0x3d   :  { %437 = vmatpush.msra.mxu3 %v1893_v43  ;;  %472 = vmatpush.msra.mxu0 %v1650_v9 }
  0x3e   :  { %492 = vmatpush.msra.mxu1 %v1658_v12  ;;  %512 = vmatpush.msrb.mxu2 %v1652_v10 }
  0x3f   :  { %378 = vmatmul.f32.vlgmr.msrb.gmra.mxu0 %v1567_v15  ;;  %531 = vmatpush.msrb.mxu3 %v1654_v11 }
  0x40   :  { %1342 = vmatmul.msk.f32.gmra.mxu2 %vm70_vm0, %v62_v56  ;;  %398 = vmatmul.f32.vlgmr.msrb.gmra.mxu1 %v1567_v15 }
  0x41   :  { %1350 = vmatmul.msk.f32.gmra.mxu3 %vm70_vm0, %v62_v56  ;;  %473 = vmatpush.msra.mxu0 %v1661_v13  ;;  %v2754_v56 = vld [vmem:[#allocation20_spill] sm:$0xff] }
  0x42   :  { %532 = vmatpush.msrb.mxu3 %v1678_v17  ;;  %493 = vmatpush.msra.mxu1 %v1683_v18 }
  0x43   :  { %513 = vmatpush.msrb.mxu2 %v1664_v14  ;;  %474 = vmatpush.msra.mxu0 %v1685_v19 }
  0x44   :  { %533 = vmatpush.msrb.mxu3 %v1694_v21  ;;  %494 = vmatpush.msra.mxu1 %v1700_v22 }
  0x45   :  { %514 = vmatpush.msrb.mxu2 %v1692_v20  ;;  %475 = vmatpush.msra.mxu0 %v1702_v23 }
  0x46   :  { %534 = vmatpush.msrb.mxu3 %v1708_v25  ;;  %495 = vmatpush.msra.mxu1 %v1710_v26 }
  0x47   :  { %515 = vmatpush.msrb.mxu2 %v1706_v24  ;;  %476 = vmatpush.msra.mxu0 %v1712_v27 }
  0x48   :  { %1343 = vmatmul.msk.f32.gmra.mxu2 %vm70_vm0, %v63_v4  ;;  %535 = vmatpush.msrb.mxu3 %v1720_v29 }
  0x49   :  { %1351 = vmatmul.msk.f32.gmra.mxu3 %vm70_vm0, %v63_v4  ;;  %496 = vmatpush.msra.mxu1 %v1731_v31  ;;  %v2755_v4 = vld [vmem:[#allocation18_spill] sm:$0xff] }
  0x4a   :  { %516 = vmatpush.msrb.mxu2 %v1718_v28  ;;  %536 = vmatpush.msrb.mxu3 %v1743_v34 }
  0x4b   :  { %477 = vmatpush.msra.mxu0 %v1733_v32  ;;  %497 = vmatpush.msra.mxu1 %v1749_v35 }
  0x4c   :  { %517 = vmatpush.msrb.mxu2 %v1741_v33  ;;  %537 = vmatpush.msrb.mxu3 %v1757_v38 }
  0x4d   :  { %478 = vmatpush.msra.mxu0 %v1751_v36  ;;  %498 = vmatpush.msra.mxu1 %v1759_v39 }
  0x4e   :  { %538 = vmatpush.msrb.mxu3 %v1769_v42  ;;  %518 = vmatpush.msrb.mxu2 %v1755_v37 }
  0x4f   :  { %479 = vmatpush.msra.mxu0 %v1761_v40  ;;  %499 = vmatpush.msra.mxu1 %v1780_v44 }
  0x50   :  { %1344 = vmatmul.msk.f32.gmra.mxu2 %vm70_vm0, %v1628_v3  ;;  %539 = vmatpush.msrb.mxu3 %v1792_v47 }
  0x51   :  { %1352 = vmatmul.msk.f32.gmra.mxu3 %vm70_vm0, %v1628_v3  ;;  %519 = vmatpush.msrb.mxu2 %v1767_v41  ;;  %v2753_v3 = vld [vmem:[#allocation15_spill] sm:$0xff] }
  0x52   :  { %480 = vmatpush.msra.mxu0 %v1782_v45  ;;  %500 = vmatpush.msra.mxu1 %v1798_v48 }
  0x53   :  { %520 = vmatpush.msrb.mxu2 %v1790_v46  ;;  %540 = vmatpush.msrb.mxu3 %v1806_v51 }
  0x54   :  { %481 = vmatpush.msra.mxu0 %v1800_v49  ;;  %501 = vmatpush.msra.mxu1 %v1808_v52 }
  0x55   :  { %521 = vmatpush.msrb.mxu2 %v1804_v50  ;;  %541 = vmatpush.msrb.mxu3 %v1818_v55 }
  0x56   :  { %482 = vmatpush.msra.mxu0 %v1810_v53  ;;  %502 = vmatpush.msra.mxu1 %v1827_v57 }
  0x57   :  { %522 = vmatpush.msrb.mxu2 %v1816_v54  ;;  %542 = vmatpush.msrb.mxu3 %v1845_v62 }
  0x58   :  { %1345 = vmatmul.msk.f32.gmra.mxu2 %vm70_vm0, %v1674_v16  ;;  %483 = vmatpush.msra.mxu0 %v1829_v58 }
  0x59   :  { %1353 = vmatmul.msk.f32.gmra.mxu3 %vm70_vm0, %v1674_v16  ;;  %503 = vmatpush.msra.mxu1 %v1836_v59  ;;  %v2756_v16 = vld [vmem:[#allocation21_spill] sm:$0xff] }
  0x5a   :  { %523 = vmatpush.msrb.mxu2 %v1843_v61  ;;  %543 = vmatpush.msrb.mxu3 %v1851_v0  ;;  %v2757_v0 = vld [vmem:[#allocation23_spill] sm:$0xff] }
  0x5b   :  { %484 = vmatpush.msra.mxu0 %v2753_v3  ;;  %504 = vmatpush.msra.mxu1 %v2754_v56 }
  0x5c   :  { %524 = vmatpush.msrb.mxu2 %v2755_v4  ;;  %544 = vmatpush.msrb.mxu3 %v1882_v1 }
  0x5d   :  { %485 = vmatpush.msra.mxu0 %v2756_v16  ;;  %505 = vmatpush.msra.mxu1 %v1868_v5 }
  0x5e   :  { %545 = vmatpush.msrb.mxu3 %v1888_v60  ;;  %525 = vmatpush.msrb.mxu2 %v1880_v63 }
  0x5f   :  { %486 = vmatpush.msra.mxu0 %v2757_v0  ;;  %506 = vmatpush.msra.mxu1 %v1878_v30 }
  0x60   :  { %418 = vmatmul.f32.vlgmr.msra.gmra.mxu2 %v1567_v15  ;;  %546 = vmatpush.msrb.mxu3 %v1893_v43 }
  0x61   :  { %438 = vmatmul.f32.vlgmr.msra.gmra.mxu3 %v1567_v15  ;;  %526 = vmatpush.msrb.mxu2 %v1886_v2  ;;  %v2758_v15 = vld [vmem:[#allocation19_spill] sm:$0xff] }
  0x62   :  { %580 = vmatpush.msrb.mxu0 %v1642_v7  ;;  %600 = vmatpush.msrb.mxu1 %v1648_v8 }
  0x63   :  { %620 = vmatpush.msra.mxu2 %v1640_v6  ;;  %640 = vmatpush.msra.mxu3 %v1654_v11 }
  0x64   :  { %581 = vmatpush.msrb.mxu0 %v1650_v9  ;;  %601 = vmatpush.msrb.mxu1 %v1658_v12 }
  0x65   :  { %621 = vmatpush.msra.mxu2 %v1652_v10  ;;  %641 = vmatpush.msra.mxu3 %v1678_v17 }
  0x66   :  { %582 = vmatpush.msrb.mxu0 %v1661_v13  ;;  %602 = vmatpush.msrb.mxu1 %v1683_v18 }
  0x67   :  { %622 = vmatpush.msra.mxu2 %v1664_v14  ;;  %642 = vmatpush.msra.mxu3 %v1694_v21 }
  0x68   :  { %583 = vmatpush.msrb.mxu0 %v1685_v19  ;;  %603 = vmatpush.msrb.mxu1 %v1700_v22 }
  0x69   :  { %623 = vmatpush.msra.mxu2 %v1692_v20  ;;  %643 = vmatpush.msra.mxu3 %v1708_v25 }
  0x6a   :  { %584 = vmatpush.msrb.mxu0 %v1702_v23  ;;  %604 = vmatpush.msrb.mxu1 %v1710_v26 }
  0x6b   :  { %624 = vmatpush.msra.mxu2 %v1706_v24  ;;  %644 = vmatpush.msra.mxu3 %v1720_v29 }
  0x6c   :  { %585 = vmatpush.msrb.mxu0 %v1712_v27  ;;  %605 = vmatpush.msrb.mxu1 %v1731_v31 }
  0x6d   :  { %625 = vmatpush.msra.mxu2 %v1718_v28  ;;  %645 = vmatpush.msra.mxu3 %v1743_v34 }
  0x6e   :  { %586 = vmatpush.msrb.mxu0 %v1733_v32  ;;  %606 = vmatpush.msrb.mxu1 %v1749_v35 }
  0x6f   :  { %626 = vmatpush.msra.mxu2 %v1741_v33  ;;  %646 = vmatpush.msra.mxu3 %v1757_v38 }
  0x70   :  { %587 = vmatpush.msrb.mxu0 %v1751_v36  ;;  %607 = vmatpush.msrb.mxu1 %v1759_v39 }
  0x71   :  { %627 = vmatpush.msra.mxu2 %v1755_v37  ;;  %647 = vmatpush.msra.mxu3 %v1769_v42 }
  0x72   :  { %588 = vmatpush.msrb.mxu0 %v1761_v40  ;;  %608 = vmatpush.msrb.mxu1 %v1780_v44 }
  0x73   :  { %628 = vmatpush.msra.mxu2 %v1767_v41  ;;  %648 = vmatpush.msra.mxu3 %v1792_v47 }
  0x74   :  { %589 = vmatpush.msrb.mxu0 %v1782_v45  ;;  %609 = vmatpush.msrb.mxu1 %v1798_v48 }
  0x75   :  { %629 = vmatpush.msra.mxu2 %v1790_v46  ;;  %649 = vmatpush.msra.mxu3 %v1806_v51 }
  0x76   :  { %590 = vmatpush.msrb.mxu0 %v1800_v49  ;;  %610 = vmatpush.msrb.mxu1 %v1808_v52 }
  0x77   :  { %630 = vmatpush.msra.mxu2 %v1804_v50  ;;  %650 = vmatpush.msra.mxu3 %v1818_v55 }
  0x78   :  { %591 = vmatpush.msrb.mxu0 %v1810_v53  ;;  %611 = vmatpush.msrb.mxu1 %v1827_v57 }
  0x79   :  { %631 = vmatpush.msra.mxu2 %v1816_v54  ;;  %651 = vmatpush.msra.mxu3 %v1845_v62 }
  0x7a   :  { %592 = vmatpush.msrb.mxu0 %v1829_v58  ;;  %612 = vmatpush.msrb.mxu1 %v1836_v59 }
  0x7b   :  { %632 = vmatpush.msra.mxu2 %v1843_v61  ;;  %652 = vmatpush.msra.mxu3 %v2758_v15 }
  0x7c   :  { %593 = vmatpush.msrb.mxu0 %v2753_v3  ;;  %613 = vmatpush.msrb.mxu1 %v2754_v56 }
  0x7d   :  { %633 = vmatpush.msra.mxu2 %v2755_v4  ;;  %653 = vmatpush.msra.mxu3 %v1882_v1 }
  0x7e   :  { %594 = vmatpush.msrb.mxu0 %v2756_v16  ;;  %614 = vmatpush.msrb.mxu1 %v1868_v5 }
  0x7f   :  { %634 = vmatpush.msra.mxu2 %v1880_v63  ;;  %654 = vmatpush.msra.mxu3 %v1888_v60 }
  0x80   :  { %595 = vmatpush.msrb.mxu0 %v2757_v0  ;;  %615 = vmatpush.msrb.mxu1 %v1878_v30 }
  0x81   :  { %635 = vmatpush.msra.mxu2 %v1886_v2  ;;  %655 = vmatpush.msra.mxu3 %v1893_v43 }
  0x8c   :  { %v112_v16 = vpop.f32.mrf.mxu0 }
  0x8d   :  { %v153_v1 = vpop.f32.mrf.mxu1 }
  0x92   :  { %v2042_v56 = vpop.f32.mrf.mxu2 }
  0x93   :  { %2759 = vst [vmem:[#allocation30_spill] sm:$0xff] %v2042_v56  ;;  %v2044_v4 = vpop.f32.mrf.mxu3 }
  0x94   :  { %2760 = vst [vmem:[#allocation31_spill] sm:$0xff] %v2044_v4  ;;  %v2052_v60 = vpop.f32.mrf.mxu0 }
  0x95   :  { %v2050_v63 = vpop.f32.mrf.mxu1  ;;  %2764 = vst [vmem:[#allocation35_spill] sm:$0xff] %v2052_v60 }
  0x96   :  { %2763 = vst [vmem:[#allocation34_spill] sm:$0xff] %v2050_v63 }
  0x9b   :  { %v2046_v3 = vpop.f32.mrf.mxu2 }
  0x9c   :  { %2761 = vst [vmem:[#allocation32_spill] sm:$0xff] %v2046_v3  ;;  %v2048_v5 = vpop.f32.mrf.mxu3  ;;  %v2056_v2 = vpop.f32.mrf.mxu0 }
  0x9d   :  { %2762 = vst [vmem:[#allocation33_spill] sm:$0xff] %v2048_v5  ;;  %v2054_v15 = vpop.f32.mrf.mxu1 }
  0x9e   :  { %2765 = vst [vmem:[#allocation36_spill] sm:$0xff] %v2054_v15 }
  0x9f   :  { %2766 = vst [vmem:[#allocation37_spill] sm:$0xff] %v2056_v2 }
  0xa3   :  { %v194_v0 = vpop.f32.mrf.mxu2 }
  0xa4   :  { %v235_v30 = vpop.f32.mrf.mxu3  ;;  %v2068_v5 = vpop.f32.mrf.mxu0 }
  0xa5   :  { %v2062_v4 = vpop.f32.mrf.mxu1  ;;  %2772 = vst [vmem:[#allocation43_spill] sm:$0xff] %v2068_v5 }
  0xa6   :  { %2769 = vst [vmem:[#allocation40_spill] sm:$0xff] %v2062_v4 }
  0xab   :  { %v2058_v43 = vpop.f32.mrf.mxu2 }
  0xac   :  { %2767 = vst [vmem:[#allocation38_spill] sm:$0xff] %v2058_v43  ;;  %v2060_v56 = vpop.f32.mrf.mxu3  ;;  %v2076_v15 = vpop.f32.mrf.mxu0 }
  0xad   :  { %2768 = vst [vmem:[#allocation39_spill] sm:$0xff] %v2060_v56  ;;  %v2074_v59 = vpop.f32.mrf.mxu1 }
  0xae   :  { %2775 = vst [vmem:[#allocation46_spill] sm:$0xff] %v2074_v59 }
  0xaf   :  { %2776 = vst [vmem:[#allocation47_spill] sm:$0xff] %v2076_v15 }
  0xb3   :  { %v2064_v61 = vpop.f32.mrf.mxu2 }
  0xb4   :  { %2770 = vst [vmem:[#allocation41_spill] sm:$0xff] %v2064_v61  ;;  %v2066_v3 = vpop.f32.mrf.mxu3  ;;  %v2084_v4 = vpop.f32.mrf.mxu0 }
  0xb5   :  { %2771 = vst [vmem:[#allocation42_spill] sm:$0xff] %v2066_v3  ;;  %v2082_v56 = vpop.f32.mrf.mxu1 }
  0xb6   :  { %2779 = vst [vmem:[#allocation50_spill] sm:$0xff] %v2082_v56 }
  0xb7   :  { %2780 = vst [vmem:[#allocation51_spill] sm:$0xff] %v2084_v4 }
  0xbb   :  { %v2070_v63 = vpop.f32.mrf.mxu2 }
  0xbc   :  { %2773 = vst [vmem:[#allocation44_spill] sm:$0xff] %v2070_v63  ;;  %v2072_v60 = vpop.f32.mrf.mxu3  ;;  %v379_v63 = vpop.f32.mrf.mxu0 }
  0xbd   :  { %2774 = vst [vmem:[#allocation45_spill] sm:$0xff] %v2072_v60  ;;  %v399_v5 = vpop.f32.mrf.mxu1  ;;  %v442_v15 = vadd.f32 %v379_v63, %v112_v16 }
  0xbe   :  { %v443_v60 = vadd.f32 %v399_v5, %v153_v1 }
  0xc0   :  { %v450_v62 = vmul.f32 0.5, %v443_v60 }
  0xc2   :  { %1365 = vtanh.f32 %v450_v62 }
  0xc3   :  { %v2078_v2 = vpop.f32.mrf.mxu2 }
  0xc4   :  { %2777 = vst [vmem:[#allocation48_spill] sm:$0xff] %v2078_v2  ;;  %v2080_v43 = vpop.f32.mrf.mxu3  ;;  %v446_v2 = vmul.f32 0.5, %v442_v15 }
  0xc5   :  { %2778 = vst [vmem:[#allocation49_spill] sm:$0xff] %v2080_v43 }
  0xc6   :  { %1367 = vtanh.f32 %v446_v2 }
  0xc8   :  { %v1366_v4 = vpop.eup %1365 }
  0xc9   :  { %v452_v53 = vmul.f32 0.5, %v1366_v4  ;;  %v2795_v4 = vld [vmem:[#allocation19_spill] sm:$0xff] }
  0xcb   :  { %v2086_v61 = vpop.f32.mrf.mxu2 }
  0xcc   :  { %2781 = vst [vmem:[#allocation52_spill] sm:$0xff] %v2086_v61  ;;  %v2088_v3 = vpop.f32.mrf.mxu3  ;;  %v1368_v43 = vpop.eup %1367 }
  0xcd   :  { %2782 = vst [vmem:[#allocation53_spill] sm:$0xff] %v2088_v3  ;;  %v448_v1 = vmul.f32 0.5, %v1368_v43  ;;  %v2792_v43 = vld [vmem:[#allocation13_spill] sm:$0xff] }
  0xcf   :  { %v449_v60 = vadd.f32 0.5, %v448_v1  ;;  %v2796_v1 = vld [vmem:[#allocation15_spill] sm:$0xff] }
  0xd3   :  { %v2090_v58 = vpop.f32.mrf.mxu2 }
  0xd4   :  { %2783 = vst [vmem:[#allocation54_spill] sm:$0xff] %v2090_v58  ;;  %v2092_v59 = vpop.f32.mrf.mxu3  ;;  %v2806_v58 = vld [vmem:[#allocation27_spill] sm:$0xff] }
  0xd5   :  { %2784 = vst [vmem:[#allocation55_spill] sm:$0xff] %v2092_v59  ;;  %v453_v59 = vadd.f32 0.5, %v452_v53  ;;  %v2787_v53 = vld [vmem:[#allocation11_spill] sm:$0xff] }
  0xd7   :  { %v459_v16 = vmul.f32 0.0, %v453_v59  ;;  %v2790_v59 = vld [vmem:[#allocation10_spill] sm:$0xff] }
  0xdb   :  { %v2094_v54 = vpop.f32.mrf.mxu2 }
  0xdc   :  { %2785 = vst [vmem:[#allocation56_spill] sm:$0xff] %v2094_v54  ;;  %v2096_v56 = vpop.f32.mrf.mxu3 }
  0xdd   :  { %2786 = vst [vmem:[#allocation57_spill] sm:$0xff] %v2096_v56 }
  0xe3   :  { %v419_v61 = vpop.f32.mrf.mxu2 }
  0xe4   :  { %v444_v3 = vadd.f32 %v419_v61, %v194_v0  ;;  %v439_v57 = vpop.f32.mrf.mxu3 }
  0xe5   :  { %v445_v55 = vadd.f32 %v439_v57, %v235_v30  ;;  %v2789_v57 = vld [vmem:[#allocation12_spill] sm:$0xff]  ;;  %v2791_v30 = vld [vmem:[#allocation17_spill] sm:$0xff] }
  0xe6   :  { %1369 = vtanh.f32 %v444_v3  ;;  %v2793_v3 = vld [vmem:[#allocation14_spill] sm:$0xff] }
  0xe7   :  { %v455_v5 = vmul.f32 0.5, %v445_v55  ;;  %v2788_v55 = vld [vmem:[#allocation9_spill] sm:$0xff] }
  0xe9   :  { %1371 = vtanh.f32 %v455_v5  ;;  %v2797_v5 = vld [vmem:[#allocation20_spill] sm:$0xff] }
  0xec   :  { %v1370_v63 = vpop.eup %1369 }
  0xed   :  { %v460_v15 = vmul.f32 %v1370_v63, %v449_v60  ;;  %v2798_v60 = vld [vmem:[#allocation18_spill] sm:$0xff] }
  0xee   :  { %v2799_v63 = vld [vmem:[#allocation26_spill] sm:$0xff] }
  0xef   :  { %v1372_v62 = vpop.eup %1371  ;;  %v2098_v54 = vadd.f32 %v460_v15, %v459_v16  ;;  %v2800_v16 = vld [vmem:[#allocation21_spill] sm:$0xff]  ;;  %v2801_v15 = vld [vmem:[#allocation22_spill] sm:$0xff] }
  0xf0   :  { %v457_v2 = vmul.f32 0.5, %v1372_v62  ;;  %v2802_v62 = vld [vmem:[#allocation25_spill] sm:$0xff] }
  0xf1   :  { %1373 = vtanh.f32 %v2098_v54 }
  0xf2   :  { %v458_v56 = vadd.f32 0.5, %v457_v2  ;;  %v2803_v2 = vld [vmem:[#allocation28_spill] sm:$0xff] }
  0xf7   :  { %v1374_v61 = vpop.eup %1373 }
  0xf8   :  { %v463_v0 = vmul.f32 %v1374_v61, %v458_v56  ;;  %v2794_v56 = vld [vmem:[#allocation16_spill] sm:$0xff]  ;;  %v2804_v61 = vld [vmem:[#allocation23_spill] sm:$0xff] }
  0xfa   :  { %487 = vmatmul.f32.vlgmr.msra.gmra.mxu0 %v463_v0  ;;  %507 = vmatmul.f32.vlgmr.msra.gmra.mxu1 %v463_v0 }
  0xfb   :  { %527 = vmatmul.f32.vlgmr.msrb.gmra.mxu2 %v463_v0  ;;  %547 = vmatmul.f32.vlgmr.msrb.gmra.mxu3 %v463_v0  ;;  %v2805_v0 = vld [vmem:[#allocation24_spill] sm:$0xff] }
  0xfc   :  { %689 = vmatpush.msra.mxu0 %v1642_v7  ;;  %709 = vmatpush.msra.mxu1 %v1648_v8 }
  0xfd   :  { %729 = vmatpush.msrb.mxu2 %v1640_v6  ;;  %749 = vmatpush.msrb.mxu3 %v1654_v11 }
  0xfe   :  { %690 = vmatpush.msra.mxu0 %v1650_v9  ;;  %710 = vmatpush.msra.mxu1 %v1658_v12 }
  0xff   :  { %730 = vmatpush.msrb.mxu2 %v1652_v10  ;;  %750 = vmatpush.msrb.mxu3 %v1678_v17 }
 0x100   :  { %691 = vmatpush.msra.mxu0 %v1661_v13  ;;  %711 = vmatpush.msra.mxu1 %v1683_v18 }
 0x101   :  { %731 = vmatpush.msrb.mxu2 %v1664_v14  ;;  %751 = vmatpush.msrb.mxu3 %v1694_v21 }
 0x102   :  { %692 = vmatpush.msra.mxu0 %v1685_v19  ;;  %712 = vmatpush.msra.mxu1 %v1700_v22 }
 0x103   :  { %732 = vmatpush.msrb.mxu2 %v1692_v20  ;;  %752 = vmatpush.msrb.mxu3 %v1708_v25 }
 0x104   :  { %693 = vmatpush.msra.mxu0 %v1702_v23  ;;  %713 = vmatpush.msra.mxu1 %v1710_v26 }
 0x105   :  { %733 = vmatpush.msrb.mxu2 %v1706_v24  ;;  %753 = vmatpush.msrb.mxu3 %v1720_v29 }
 0x106   :  { %694 = vmatpush.msra.mxu0 %v1712_v27  ;;  %714 = vmatpush.msra.mxu1 %v1731_v31 }
 0x107   :  { %734 = vmatpush.msrb.mxu2 %v1718_v28  ;;  %754 = vmatpush.msrb.mxu3 %v1743_v34 }
 0x108   :  { %695 = vmatpush.msra.mxu0 %v1733_v32  ;;  %715 = vmatpush.msra.mxu1 %v1749_v35 }
 0x109   :  { %735 = vmatpush.msrb.mxu2 %v1741_v33  ;;  %755 = vmatpush.msrb.mxu3 %v1757_v38 }
 0x10a   :  { %696 = vmatpush.msra.mxu0 %v1751_v36  ;;  %716 = vmatpush.msra.mxu1 %v1759_v39 }
 0x10b   :  { %736 = vmatpush.msrb.mxu2 %v1755_v37  ;;  %756 = vmatpush.msrb.mxu3 %v1769_v42 }
 0x10c   :  { %697 = vmatpush.msra.mxu0 %v1761_v40  ;;  %717 = vmatpush.msra.mxu1 %v1780_v44 }
 0x10d   :  { %737 = vmatpush.msrb.mxu2 %v1767_v41  ;;  %757 = vmatpush.msrb.mxu3 %v1792_v47 }
 0x10e   :  { %698 = vmatpush.msra.mxu0 %v1782_v45  ;;  %718 = vmatpush.msra.mxu1 %v1798_v48 }
 0x10f   :  { %738 = vmatpush.msrb.mxu2 %v1790_v46  ;;  %758 = vmatpush.msrb.mxu3 %v1806_v51 }
 0x110   :  { %699 = vmatpush.msra.mxu0 %v1800_v49  ;;  %719 = vmatpush.msra.mxu1 %v1808_v52 }
 0x111   :  { %739 = vmatpush.msrb.mxu2 %v1804_v50  ;;  %759 = vmatpush.msrb.mxu3 %v2787_v53 }
 0x112   :  { %700 = vmatpush.msra.mxu0 %v2788_v55  ;;  %720 = vmatpush.msra.mxu1 %v2789_v57 }
 0x113   :  { %740 = vmatpush.msrb.mxu2 %v2790_v59  ;;  %760 = vmatpush.msrb.mxu3 %v2791_v30  ;;  %v2811_v30 = vld [vmem:[#allocation39_spill] sm:$0xff] }
 0x114   :  { %701 = vmatpush.msra.mxu0 %v2792_v43  ;;  %721 = vmatpush.msra.mxu1 %v2793_v3  ;;  %v2810_v43 = vld [vmem:[#allocation38_spill] sm:$0xff] }
 0x115   :  { %741 = vmatpush.msrb.mxu2 %v2794_v56  ;;  %761 = vmatpush.msrb.mxu3 %v2795_v4  ;;  %v2808_v4 = vld [vmem:[#allocation35_spill] sm:$0xff]  ;;  %v2809_v56 = vld [vmem:[#allocation34_spill] sm:$0xff] }
 0x116   :  { %702 = vmatpush.msra.mxu0 %v2796_v1  ;;  %722 = vmatpush.msra.mxu1 %v2797_v5  ;;  %v2807_v1 = vld [vmem:[#allocation29_spill] sm:$0xff] }
 0x117   :  { %742 = vmatpush.msrb.mxu2 %v2798_v60  ;;  %762 = vmatpush.msrb.mxu3 %v2799_v63 }
 0x118   :  { %703 = vmatpush.msra.mxu0 %v2800_v16  ;;  %723 = vmatpush.msra.mxu1 %v2801_v15 }
 0x119   :  { %743 = vmatpush.msrb.mxu2 %v2802_v62  ;;  %763 = vmatpush.msrb.mxu3 %v2803_v2 }
 0x11a   :  { %704 = vmatpush.msra.mxu0 %v2804_v61  ;;  %724 = vmatpush.msra.mxu1 %v2805_v0 }
 0x11b   :  { %744 = vmatpush.msrb.mxu2 %v2806_v58  ;;  %764 = vmatpush.msrb.mxu3 %v2807_v1 }
 0x177   :  { %v488_v5 = vpop.f32.mrf.mxu0  ;;  %v508_v60 = vpop.f32.mrf.mxu1 }
 0x178   :  { %v551_v63 = vadd.f32 %v488_v5, %v2808_v4  ;;  %v552_v16 = vadd.f32 %v508_v60, %v2809_v56 }
 0x17a   :  { %v555_v3 = vmul.f32 0.5, %v551_v63  ;;  %v559_v15 = vmul.f32 0.5, %v552_v16 }
 0x17c   :  { %1375 = vtanh.f32 %v555_v3 }
 0x17d   :  { %1377 = vtanh.f32 %v559_v15 }
 0x17e   :  { %v528_v62 = vpop.f32.mrf.mxu2  ;;  %v548_v2 = vpop.f32.mrf.mxu3 }
 0x17f   :  { %v553_v61 = vadd.f32 %v528_v62, %v2810_v43  ;;  %v554_v0 = vadd.f32 %v548_v2, %v2811_v30 }
 0x181   :  { %1379 = vtanh.f32 %v553_v61  ;;  %v564_v58 = vmul.f32 0.5, %v554_v0 }
 0x182   :  { %v1376_v59 = vpop.eup %1375 }
 0x183   :  { %v1378_v1 = vpop.eup %1377  ;;  %v557_v57 = vmul.f32 0.5, %v1376_v59  ;;  %1381 = vtanh.f32 %v564_v58 }
 0x184   :  { %v561_v55 = vmul.f32 0.5, %v1378_v1 }
 0x185   :  { %v558_v4 = vadd.f32 0.5, %v557_v57 }
 0x186   :  { %v562_v5 = vadd.f32 0.5, %v561_v55 }
 0x187   :  { %v1380_v56 = vpop.eup %1379 }
 0x188   :  { %v568_v60 = vmul.f32 %v562_v5, %v2098_v54  ;;  %v569_v3 = vmul.f32 %v1380_v56, %v558_v4 }
 0x189   :  { %v1382_v63 = vpop.eup %1381 }
 0x18a   :  { %v2170_v16 = vadd.f32 %v569_v3, %v568_v60  ;;  %v566_v43 = vmul.f32 0.5, %v1382_v63  ;;  %v2245_v3 = vld [vmem:[#allocation3 + $0x1e0] sm:$0xff]  ;;  %v2248_v63 = vld [vmem:[#allocation3 + $0x1e8] sm:$0xff] }
 0x18c   :  { %1383 = vtanh.f32 %v2170_v16  ;;  %v567_v30 = vadd.f32 0.5, %v566_v43  ;;  %v2254_v43 = vld [vmem:[#allocation3 + $0x1f8] sm:$0xff] }
 0x192   :  { %v1384_v15 = vpop.eup %1383 }
 0x193   :  { %v572_v62 = vmul.f32 %v1384_v15, %v567_v30  ;;  %v2257_v30 = vld [vmem:[#allocation3 + $0x1c0] sm:$0xff]  ;;  %v2260_v15 = vld [vmem:[#allocation3 + $0x1c8] sm:$0xff] }
 0x195   :  { %596 = vmatmul.f32.vlgmr.msrb.gmra.mxu0 %v572_v62  ;;  %616 = vmatmul.f32.vlgmr.msrb.gmra.mxu1 %v572_v62 }
 0x196   :  { %636 = vmatmul.f32.vlgmr.msra.gmra.mxu2 %v572_v62  ;;  %656 = vmatmul.f32.vlgmr.msra.gmra.mxu3 %v572_v62  ;;  %v2263_v62 = vld [vmem:[#allocation3 + $0x1d0] sm:$0xff] }
 0x197   :  { %798 = vmatpush.msrb.mxu0 %v1642_v7  ;;  %818 = vmatpush.msrb.mxu1 %v1648_v8  ;;  %v2813_v7 = vld [vmem:[#allocation12_spill] sm:$0xff]  ;;  %v2814_v8 = vld [vmem:[#allocation10_spill] sm:$0xff] }
 0x198   :  { %838 = vmatpush.msra.mxu2 %v1640_v6  ;;  %858 = vmatpush.msra.mxu3 %v1654_v11  ;;  %v2812_v6 = vld [vmem:[#allocation9_spill] sm:$0xff]  ;;  %v2817_v11 = vld [vmem:[#allocation14_spill] sm:$0xff] }
 0x199   :  { %799 = vmatpush.msrb.mxu0 %v1650_v9  ;;  %819 = vmatpush.msrb.mxu1 %v1658_v12  ;;  %v2815_v9 = vld [vmem:[#allocation17_spill] sm:$0xff]  ;;  %v2818_v12 = vld [vmem:[#allocation16_spill] sm:$0xff] }
 0x19a   :  { %839 = vmatpush.msra.mxu2 %v1652_v10  ;;  %859 = vmatpush.msra.mxu3 %v1678_v17  ;;  %v2816_v10 = vld [vmem:[#allocation13_spill] sm:$0xff]  ;;  %v2821_v17 = vld [vmem:[#allocation20_spill] sm:$0xff] }
 0x19b   :  { %800 = vmatpush.msrb.mxu0 %v1661_v13  ;;  %820 = vmatpush.msrb.mxu1 %v1683_v18  ;;  %v2819_v13 = vld [vmem:[#allocation19_spill] sm:$0xff]  ;;  %v2822_v18 = vld [vmem:[#allocation18_spill] sm:$0xff] }
 0x19c   :  { %840 = vmatpush.msra.mxu2 %v1664_v14  ;;  %860 = vmatpush.msra.mxu3 %v1694_v21  ;;  %v2820_v14 = vld [vmem:[#allocation15_spill] sm:$0xff]  ;;  %v2825_v21 = vld [vmem:[#allocation22_spill] sm:$0xff] }
 0x19d   :  { %801 = vmatpush.msrb.mxu0 %v1685_v19  ;;  %821 = vmatpush.msrb.mxu1 %v1700_v22  ;;  %v2823_v19 = vld [vmem:[#allocation26_spill] sm:$0xff]  ;;  %v2826_v22 = vld [vmem:[#allocation25_spill] sm:$0xff] }
 0x19e   :  { %841 = vmatpush.msra.mxu2 %v1692_v20  ;;  %861 = vmatpush.msra.mxu3 %v1708_v25  ;;  %v2824_v20 = vld [vmem:[#allocation21_spill] sm:$0xff]  ;;  %v2829_v25 = vld [vmem:[#allocation24_spill] sm:$0xff] }
 0x19f   :  { %802 = vmatpush.msrb.mxu0 %v1702_v23  ;;  %822 = vmatpush.msrb.mxu1 %v1710_v26  ;;  %v2827_v23 = vld [vmem:[#allocation28_spill] sm:$0xff]  ;;  %v2830_v26 = vld [vmem:[#allocation27_spill] sm:$0xff] }
 0x1a0   :  { %842 = vmatpush.msra.mxu2 %v1706_v24  ;;  %862 = vmatpush.msra.mxu3 %v1720_v29  ;;  %v2828_v24 = vld [vmem:[#allocation23_spill] sm:$0xff] }
 0x1a1   :  { %803 = vmatpush.msrb.mxu0 %v1712_v27  ;;  %823 = vmatpush.msrb.mxu1 %v1731_v31  ;;  %v2831_v27 = vld [vmem:[#allocation29_spill] sm:$0xff] }
 0x1a2   :  { %843 = vmatpush.msra.mxu2 %v1718_v28  ;;  %863 = vmatpush.msra.mxu3 %v1743_v34  ;;  %v2832_v31 = vld [vmem:[#allocation37_spill] sm:$0xff] }
 0x1a3   :  { %804 = vmatpush.msrb.mxu0 %v1733_v32  ;;  %824 = vmatpush.msrb.mxu1 %v1749_v35 }
 0x1a4   :  { %844 = vmatpush.msra.mxu2 %v1741_v33  ;;  %864 = vmatpush.msra.mxu3 %v1757_v38  ;;  %v2833_v33 = vld [vmem:[#allocation36_spill] sm:$0xff] }
 0x1a5   :  { %805 = vmatpush.msrb.mxu0 %v1751_v36  ;;  %825 = vmatpush.msrb.mxu1 %v1759_v39  ;;  %v2834_v39 = vld [vmem:[#allocation41_spill] sm:$0xff] }
 0x1a6   :  { %845 = vmatpush.msra.mxu2 %v1755_v37  ;;  %865 = vmatpush.msra.mxu3 %v1769_v42 }
 0x1a7   :  { %806 = vmatpush.msrb.mxu0 %v1761_v40  ;;  %826 = vmatpush.msrb.mxu1 %v1780_v44 }
 0x1a8   :  { %846 = vmatpush.msra.mxu2 %v1767_v41  ;;  %866 = vmatpush.msra.mxu3 %v1792_v47  ;;  %v2835_v41 = vld [vmem:[#allocation42_spill] sm:$0xff] }
 0x1a9   :  { %807 = vmatpush.msrb.mxu0 %v1782_v45  ;;  %827 = vmatpush.msrb.mxu1 %v1798_v48 }
 0x1aa   :  { %847 = vmatpush.msra.mxu2 %v1790_v46  ;;  %867 = vmatpush.msra.mxu3 %v1806_v51 }
 0x1ab   :  { %808 = vmatpush.msrb.mxu0 %v1800_v49  ;;  %828 = vmatpush.msrb.mxu1 %v1808_v52 }
 0x1ac   :  { %848 = vmatpush.msra.mxu2 %v1804_v50  ;;  %868 = vmatpush.msra.mxu3 %v2787_v53 }
 0x1ad   :  { %809 = vmatpush.msrb.mxu0 %v2812_v6  ;;  %829 = vmatpush.msrb.mxu1 %v2813_v7 }
 0x1ae   :  { %849 = vmatpush.msra.mxu2 %v2814_v8  ;;  %869 = vmatpush.msra.mxu3 %v2815_v9 }
 0x1af   :  { %810 = vmatpush.msrb.mxu0 %v2816_v10  ;;  %830 = vmatpush.msrb.mxu1 %v2817_v11 }
 0x1b0   :  { %850 = vmatpush.msra.mxu2 %v2818_v12  ;;  %870 = vmatpush.msra.mxu3 %v2819_v13 }
 0x1b1   :  { %811 = vmatpush.msrb.mxu0 %v2820_v14  ;;  %831 = vmatpush.msrb.mxu1 %v2821_v17 }
 0x1b2   :  { %851 = vmatpush.msra.mxu2 %v2822_v18  ;;  %871 = vmatpush.msra.mxu3 %v2823_v19 }
 0x1b3   :  { %812 = vmatpush.msrb.mxu0 %v2824_v20  ;;  %832 = vmatpush.msrb.mxu1 %v2825_v21 }
 0x1b4   :  { %852 = vmatpush.msra.mxu2 %v2826_v22  ;;  %872 = vmatpush.msra.mxu3 %v2827_v23 }
 0x1b5   :  { %813 = vmatpush.msrb.mxu0 %v2828_v24  ;;  %833 = vmatpush.msrb.mxu1 %v2829_v25 }
 0x1b6   :  { %853 = vmatpush.msra.mxu2 %v2830_v26  ;;  %873 = vmatpush.msra.mxu3 %v2831_v27 }
 0x212   :  { %v597_v28 = vpop.f32.mrf.mxu0  ;;  %v617_v29 = vpop.f32.mrf.mxu1 }
 0x213   :  { %v660_v32 = vadd.f32 %v597_v28, %v2832_v31  ;;  %v661_v34 = vadd.f32 %v617_v29, %v2833_v33  ;;  %v2266_v28 = vld [vmem:[#allocation3 + $0x1d8] sm:$0xff]  ;;  %v2269_v29 = vld [vmem:[#allocation3 + $0x1a0] sm:$0xff]  ;;  %v2272_v31 = vld [vmem:[#allocation3 + $0x1a8] sm:$0xff] }
 0x214   :  { %v2278_v33 = vld [vmem:[#allocation3 + $0x1b8] sm:$0xff] }
 0x215   :  { %v664_v35 = vmul.f32 0.5, %v660_v32  ;;  %v668_v36 = vmul.f32 0.5, %v661_v34  ;;  %v2275_v32 = vld [vmem:[#allocation3 + $0x1b0] sm:$0xff]  ;;  %v2281_v34 = vld [vmem:[#allocation3 + $0x180] sm:$0xff] }
 0x217   :  { %1385 = vtanh.f32 %v664_v35  ;;  %v2284_v35 = vld [vmem:[#allocation3 + $0x188] sm:$0xff] }
 0x218   :  { %1387 = vtanh.f32 %v668_v36  ;;  %v2287_v36 = vld [vmem:[#allocation3 + $0x190] sm:$0xff] }
 0x219   :  { %v637_v37 = vpop.f32.mrf.mxu2  ;;  %v657_v38 = vpop.f32.mrf.mxu3 }
 0x21a   :  { %v662_v40 = vadd.f32 %v637_v37, %v2834_v39  ;;  %v663_v42 = vadd.f32 %v657_v38, %v2835_v41  ;;  %v2290_v37 = vld [vmem:[#allocation3 + $0x198] sm:$0xff]  ;;  %v2293_v38 = vld [vmem:[#allocation3 + $0x160] sm:$0xff]  ;;  %v2296_v39 = vld [vmem:[#allocation3 + $0x168] sm:$0xff] }
 0x21b   :  { %v2302_v41 = vld [vmem:[#allocation3 + $0x178] sm:$0xff] }
 0x21c   :  { %1389 = vtanh.f32 %v662_v40  ;;  %v673_v44 = vmul.f32 0.5, %v663_v42  ;;  %v2299_v40 = vld [vmem:[#allocation3 + $0x170] sm:$0xff]  ;;  %v2305_v42 = vld [vmem:[#allocation3 + $0x140] sm:$0xff] }
 0x21d   :  { %v1386_v45 = vpop.eup %1385 }
 0x21e   :  { %v1388_v46 = vpop.eup %1387  ;;  %v666_v54 = vmul.f32 0.5, %v1386_v45  ;;  %1391 = vtanh.f32 %v673_v44  ;;  %v2308_v44 = vld [vmem:[#allocation3 + $0x148] sm:$0xff]  ;;  %v2311_v45 = vld [vmem:[#allocation3 + $0x150] sm:$0xff] }
 0x21f   :  { %v670_v58 = vmul.f32 0.5, %v1388_v46  ;;  %v2314_v46 = vld [vmem:[#allocation3 + $0x158] sm:$0xff] }
 0x220   :  { %v667_v55 = vadd.f32 0.5, %v666_v54  ;;  %v2317_v54 = vld [vmem:[#allocation3 + $0x120] sm:$0xff] }
 0x221   :  { %v671_v57 = vadd.f32 0.5, %v670_v58  ;;  %v2320_v58 = vld [vmem:[#allocation3 + $0x128] sm:$0xff] }
 0x222   :  { %v1390_v59 = vpop.eup %1389 }
 0x223   :  { %v677_v1 = vmul.f32 %v671_v57, %v2170_v16  ;;  %v678_v2 = vmul.f32 %v1390_v59, %v667_v55  ;;  %v2251_v16 = vld [vmem:[#allocation3 + $0x1f0] sm:$0xff]  ;;  %v2326_v57 = vld [vmem:[#allocation3 + $0x138] sm:$0xff]  ;;  %v2329_v59 = vld [vmem:[#allocation3 + $0x100] sm:$0xff] }
 0x224   :  { %v1392_v61 = vpop.eup %1391  ;;  %v2323_v55 = vld [vmem:[#allocation3 + $0x130] sm:$0xff] }
 0x225   :  { %v2242_v0 = vadd.f32 %v678_v2, %v677_v1  ;;  %v675_v4 = vmul.f32 0.5, %v1392_v61  ;;  %v2332_v1 = vld [vmem:[#allocation3 + $0x108] sm:$0xff]  ;;  %v2335_v2 = vld [vmem:[#allocation3 + $0x110] sm:$0xff]  ;;  %v2338_v61 = vld [vmem:[#allocation3 + $0x118] sm:$0xff] }
 0x226   :  { %2836 = vst [vmem:[#allocation11_spill] sm:$0xff] %v2338_v61 }
 0x227   :  { %1393 = vtanh.f32 %v2242_v0  ;;  %v676_v5 = vadd.f32 0.5, %v675_v4  ;;  %v2341_v4 = vld [vmem:[#allocation3 + $0xe0] sm:$0xff] }
 0x22d   :  { %v1394_v56 = vpop.eup %1393 }
 0x22e   :  { %v681_v60 = vmul.f32 %v1394_v56, %v676_v5  ;;  %v2344_v5 = vld [vmem:[#allocation3 + $0xe8] sm:$0xff]  ;;  %v2347_v56 = vld [vmem:[#allocation3 + $0xf0] sm:$0xff] }
 0x230   :  { %705 = vmatmul.f32.vlgmr.msra.gmra.mxu0 %v681_v60  ;;  %725 = vmatmul.f32.vlgmr.msra.gmra.mxu1 %v681_v60 }
 0x231   :  { %745 = vmatmul.f32.vlgmr.msrb.gmra.mxu2 %v681_v60  ;;  %765 = vmatmul.f32.vlgmr.msrb.gmra.mxu3 %v681_v60  ;;  %v2351_v60 = vld [vmem:[#allocation3 + $0xc0] sm:$0xff] }
 0x232   :  { %907 = vmatpush.msra.mxu0 %v2245_v3  ;;  %927 = vmatpush.msra.mxu1 %v2248_v63 }
 0x233   :  { %947 = vmatpush.msrb.mxu2 %v2251_v16  ;;  %967 = vmatpush.msrb.mxu3 %v2254_v43 }
 0x234   :  { %908 = vmatpush.msra.mxu0 %v2257_v30  ;;  %928 = vmatpush.msra.mxu1 %v2260_v15 }
 0x235   :  { %948 = vmatpush.msrb.mxu2 %v2263_v62  ;;  %968 = vmatpush.msrb.mxu3 %v2266_v28 }
 0x236   :  { %909 = vmatpush.msra.mxu0 %v2269_v29  ;;  %929 = vmatpush.msra.mxu1 %v2272_v31 }
 0x237   :  { %949 = vmatpush.msrb.mxu2 %v2275_v32  ;;  %969 = vmatpush.msrb.mxu3 %v2278_v33 }
 0x238   :  { %910 = vmatpush.msra.mxu0 %v2281_v34  ;;  %930 = vmatpush.msra.mxu1 %v2284_v35 }
 0x239   :  { %950 = vmatpush.msrb.mxu2 %v2287_v36  ;;  %970 = vmatpush.msrb.mxu3 %v2290_v37 }
 0x23a   :  { %911 = vmatpush.msra.mxu0 %v2293_v38  ;;  %931 = vmatpush.msra.mxu1 %v2296_v39 }
 0x23b   :  { %951 = vmatpush.msrb.mxu2 %v2299_v40  ;;  %971 = vmatpush.msrb.mxu3 %v2302_v41 }
 0x23c   :  { %912 = vmatpush.msra.mxu0 %v2305_v42  ;;  %932 = vmatpush.msra.mxu1 %v2308_v44 }
 0x23d   :  { %952 = vmatpush.msrb.mxu2 %v2311_v45  ;;  %972 = vmatpush.msrb.mxu3 %v2314_v46 }
 0x23e   :  { %913 = vmatpush.msra.mxu0 %v2317_v54  ;;  %933 = vmatpush.msra.mxu1 %v2320_v58 }
 0x23f   :  { %953 = vmatpush.msrb.mxu2 %v2323_v55  ;;  %973 = vmatpush.msrb.mxu3 %v2326_v57 }
 0x240   :  { %914 = vmatpush.msra.mxu0 %v2329_v59  ;;  %934 = vmatpush.msra.mxu1 %v2332_v1 }
 0x241   :  { %954 = vmatpush.msrb.mxu2 %v2335_v2  ;;  %974 = vmatpush.msrb.mxu3 %v2338_v61  ;;  %v2355_v61 = vld [vmem:[#allocation3 + $0xd0] sm:$0xff] }
 0x242   :  { %915 = vmatpush.msra.mxu0 %v2341_v4  ;;  %935 = vmatpush.msra.mxu1 %v2344_v5 }
 0x243   :  { %955 = vmatpush.msrb.mxu2 %v2347_v56  ;;  %975 = vmatpush.msrb.mxu3 %v1792_v47 }
 0x244   :  { %916 = vmatpush.msra.mxu0 %v2351_v60  ;;  %936 = vmatpush.msra.mxu1 %v1798_v48 }
 0x245   :  { %956 = vmatpush.msrb.mxu2 %v2355_v61  ;;  %976 = vmatpush.msrb.mxu3 %v1806_v51  ;;  %v2838_v51 = vld [vmem:[#allocation40_spill] sm:$0xff] }
 0x246   :  { %917 = vmatpush.msra.mxu0 %v1800_v49  ;;  %937 = vmatpush.msra.mxu1 %v1808_v52  ;;  %v2837_v49 = vld [vmem:[#allocation43_spill] sm:$0xff] }
 0x247   :  { %957 = vmatpush.msrb.mxu2 %v1804_v50  ;;  %977 = vmatpush.msrb.mxu3 %v2787_v53 }
 0x248   :  { %918 = vmatpush.msra.mxu0 %v2812_v6  ;;  %938 = vmatpush.msra.mxu1 %v2813_v7 }
 0x249   :  { %958 = vmatpush.msrb.mxu2 %v2814_v8  ;;  %978 = vmatpush.msrb.mxu3 %v2815_v9  ;;  %v2839_v9 = vld [vmem:[#allocation44_spill] sm:$0xff] }
 0x24a   :  { %919 = vmatpush.msra.mxu0 %v2816_v10  ;;  %939 = vmatpush.msra.mxu1 %v2817_v11  ;;  %v2840_v11 = vld [vmem:[#allocation45_spill] sm:$0xff] }
 0x24b   :  { %959 = vmatpush.msrb.mxu2 %v2818_v12  ;;  %979 = vmatpush.msrb.mxu3 %v2819_v13 }
 0x24c   :  { %920 = vmatpush.msra.mxu0 %v2820_v14  ;;  %940 = vmatpush.msra.mxu1 %v2821_v17 }
 0x24d   :  { %960 = vmatpush.msrb.mxu2 %v2822_v18  ;;  %980 = vmatpush.msrb.mxu3 %v2823_v19 }
 0x24e   :  { %921 = vmatpush.msra.mxu0 %v2824_v20  ;;  %941 = vmatpush.msra.mxu1 %v2825_v21 }
 0x24f   :  { %961 = vmatpush.msrb.mxu2 %v2826_v22  ;;  %981 = vmatpush.msrb.mxu3 %v2827_v23 }
 0x250   :  { %922 = vmatpush.msra.mxu0 %v2828_v24  ;;  %942 = vmatpush.msra.mxu1 %v2829_v25 }
 0x251   :  { %962 = vmatpush.msrb.mxu2 %v2830_v26  ;;  %982 = vmatpush.msrb.mxu3 %v2831_v27 }
 0x2ad   :  { %v706_v47 = vpop.f32.mrf.mxu0  ;;  %v726_v48 = vpop.f32.mrf.mxu1 }
 0x2ae   :  { %v769_v50 = vadd.f32 %v706_v47, %v2837_v49  ;;  %v770_v52 = vadd.f32 %v726_v48, %v2838_v51  ;;  %v2430_v51 = vld [vmem:[#allocation3 + $0xc8] sm:$0xff] }
 0x2b0   :  { %v773_v53 = vmul.f32 0.5, %v769_v50  ;;  %v777_v6 = vmul.f32 0.5, %v770_v52  ;;  %v2426_v50 = vld [vmem:[#allocation3 + $0xf8] sm:$0xff] }
 0x2b1   :  { %v2434_v52 = vld [vmem:[#allocation3 + $0xd8] sm:$0xff] }
 0x2b2   :  { %1395 = vtanh.f32 %v773_v53  ;;  %v2437_v53 = vld [vmem:[#allocation3 + $0xa0] sm:$0xff] }
 0x2b3   :  { %1397 = vtanh.f32 %v777_v6  ;;  %v2440_v6 = vld [vmem:[#allocation3 + $0xa8] sm:$0xff] }
 0x2b4   :  { %v746_v7 = vpop.f32.mrf.mxu2  ;;  %v766_v8 = vpop.f32.mrf.mxu3 }
 0x2b5   :  { %v771_v10 = vadd.f32 %v746_v7, %v2839_v9  ;;  %v772_v12 = vadd.f32 %v766_v8, %v2840_v11  ;;  %v2443_v7 = vld [vmem:[#allocation3 + $0xb0] sm:$0xff]  ;;  %v2446_v8 = vld [vmem:[#allocation3 + $0xb8] sm:$0xff]  ;;  %v2449_v9 = vld [vmem:[#allocation3 + $0x80] sm:$0xff] }
 0x2b6   :  { %2842 = vst [vmem:[#allocation35_spill] sm:$0xff] %v2449_v9  ;;  %v2455_v11 = vld [vmem:[#allocation3 + $0x90] sm:$0xff] }
 0x2b7   :  { %1399 = vtanh.f32 %v771_v10  ;;  %v782_v13 = vmul.f32 0.5, %v772_v12  ;;  %v2452_v10 = vld [vmem:[#allocation3 + $0x88] sm:$0xff]  ;;  %2844 = vst [vmem:[#allocation38_spill] sm:$0xff] %v2455_v11  ;;  %v2458_v12 = vld [vmem:[#allocation3 + $0x98] sm:$0xff] }
 0x2b8   :  { %v1396_v14 = vpop.eup %1395  ;;  %2843 = vst [vmem:[#allocation34_spill] sm:$0xff] %v2452_v10 }
 0x2b9   :  { %v1398_v17 = vpop.eup %1397  ;;  %v775_v18 = vmul.f32 0.5, %v1396_v14  ;;  %1401 = vtanh.f32 %v782_v13  ;;  %2845 = vst [vmem:[#allocation39_spill] sm:$0xff] %v2458_v12  ;;  %v2461_v13 = vld [vmem:[#allocation3 + $0x60] sm:$0xff]  ;;  %v2464_v14 = vld [vmem:[#allocation3 + $0x68] sm:$0xff] }
 0x2ba   :  { %v779_v19 = vmul.f32 0.5, %v1398_v17  ;;  %2846 = vst [vmem:[#allocation9_spill] sm:$0xff] %v2461_v13  ;;  %v2467_v17 = vld [vmem:[#allocation3 + $0x70] sm:$0xff] }
 0x2bb   :  { %v776_v20 = vadd.f32 0.5, %v775_v18  ;;  %2847 = vst [vmem:[#allocation12_spill] sm:$0xff] %v2464_v14  ;;  %v2470_v18 = vld [vmem:[#allocation3 + $0x78] sm:$0xff] }
 0x2bc   :  { %v780_v21 = vadd.f32 0.5, %v779_v19  ;;  %2848 = vst [vmem:[#allocation10_spill] sm:$0xff] %v2467_v17  ;;  %v2473_v19 = vld [vmem:[#allocation3 + $0x40] sm:$0xff] }
 0x2bd   :  { %v1400_v22 = vpop.eup %1399  ;;  %2849 = vst [vmem:[#allocation17_spill] sm:$0xff] %v2470_v18 }
 0x2be   :  { %v786_v23 = vmul.f32 %v780_v21, %v2242_v0  ;;  %v787_v24 = vmul.f32 %v1400_v22, %v776_v20  ;;  %v2841_v0 = vld [vmem:[#allocation11_spill] sm:$0xff]  ;;  %2850 = vst [vmem:[#allocation13_spill] sm:$0xff] %v2473_v19  ;;  %v2476_v20 = vld [vmem:[#allocation3 + $0x48] sm:$0xff]  ;;  %v2482_v22 = vld [vmem:[#allocation3 + $0x58] sm:$0xff] }
 0x2bf   :  { %v1402_v25 = vpop.eup %1401  ;;  %2851 = vst [vmem:[#allocation14_spill] sm:$0xff] %v2476_v20  ;;  %v2479_v21 = vld [vmem:[#allocation3 + $0x50] sm:$0xff] }
 0x2c0   :  { %v2388_v26 = vadd.f32 %v787_v24, %v786_v23  ;;  %v784_v27 = vmul.f32 0.5, %v1402_v25  ;;  %2852 = vst [vmem:[#allocation16_spill] sm:$0xff] %v2479_v21  ;;  %v2485_v23 = vld [vmem:[#allocation3 + $0x20] sm:$0xff]  ;;  %v2488_v24 = vld [vmem:[#allocation3 + $0x28] sm:$0xff]  ;;  %v2491_v25 = vld [vmem:[#allocation3 + $0x30] sm:$0xff] }
 0x2c1   :  { %2853 = vst [vmem:[#allocation19_spill] sm:$0xff] %v2482_v22 }
 0x2c2   :  { %1403 = vtanh.f32 %v2388_v26  ;;  %v785_v47 = vadd.f32 0.5, %v784_v27  ;;  %2854 = vst [vmem:[#allocation15_spill] sm:$0xff] %v2485_v23  ;;  %v2494_v27 = vld [vmem:[#allocation3 + $0x38] sm:$0xff] }
 0x2c3   :  { %2855 = vst [vmem:[#allocation20_spill] sm:$0xff] %v2488_v24 }
 0x2c4   :  { %2856 = vst [vmem:[#allocation18_spill] sm:$0xff] %v2491_v25 }
 0x2c5   :  { %2857 = vst [vmem:[#allocation26_spill] sm:$0xff] %v2494_v27 }
 0x2c8   :  { %v1404_v48 = vpop.eup %1403 }
 0x2c9   :  { %v790_v49 = vmul.f32 %v1404_v48, %v785_v47  ;;  %v2497_v47 = vld [vmem:[#allocation3] sm:$0xff]  ;;  %v2500_v48 = vld [vmem:[#allocation3 + $0x8] sm:$0xff] }
 0x2ca   :  { %2858 = vst [vmem:[#allocation21_spill] sm:$0xff] %v2497_v47 }
 0x2cb   :  { %814 = vmatmul.f32.vlgmr.msrb.gmra.mxu0 %v790_v49  ;;  %834 = vmatmul.f32.vlgmr.msrb.gmra.mxu1 %v790_v49  ;;  %2859 = vst [vmem:[#allocation22_spill] sm:$0xff] %v2500_v48 }
 0x2cc   :  { %854 = vmatmul.f32.vlgmr.msra.gmra.mxu2 %v790_v49  ;;  %874 = vmatmul.f32.vlgmr.msra.gmra.mxu3 %v790_v49  ;;  %v2503_v49 = vld [vmem:[#allocation3 + $0x10] sm:$0xff] }
 0x2cd   :  { %1016 = vmatpush.msrb.mxu0 %v2245_v3  ;;  %1036 = vmatpush.msrb.mxu1 %v2248_v63  ;;  %2860 = vst [vmem:[#allocation25_spill] sm:$0xff] %v2503_v49 }
 0x2ce   :  { %1056 = vmatpush.msra.mxu2 %v2251_v16  ;;  %1076 = vmatpush.msra.mxu3 %v2254_v43 }
 0x2cf   :  { %1017 = vmatpush.msrb.mxu0 %v2257_v30  ;;  %1037 = vmatpush.msrb.mxu1 %v2260_v15 }
 0x2d0   :  { %1057 = vmatpush.msra.mxu2 %v2263_v62  ;;  %1077 = vmatpush.msra.mxu3 %v2266_v28 }
 0x2d1   :  { %1018 = vmatpush.msrb.mxu0 %v2269_v29  ;;  %1038 = vmatpush.msrb.mxu1 %v2272_v31 }
 0x2d2   :  { %1058 = vmatpush.msra.mxu2 %v2275_v32  ;;  %1078 = vmatpush.msra.mxu3 %v2278_v33 }
 0x2d3   :  { %1019 = vmatpush.msrb.mxu0 %v2281_v34  ;;  %1039 = vmatpush.msrb.mxu1 %v2284_v35 }
 0x2d4   :  { %1059 = vmatpush.msra.mxu2 %v2287_v36  ;;  %1079 = vmatpush.msra.mxu3 %v2290_v37 }
 0x2d5   :  { %1020 = vmatpush.msrb.mxu0 %v2293_v38  ;;  %1040 = vmatpush.msrb.mxu1 %v2296_v39 }
 0x2d6   :  { %1060 = vmatpush.msra.mxu2 %v2299_v40  ;;  %1080 = vmatpush.msra.mxu3 %v2302_v41 }
 0x2d7   :  { %1021 = vmatpush.msrb.mxu0 %v2305_v42  ;;  %1041 = vmatpush.msrb.mxu1 %v2308_v44 }
 0x2d8   :  { %1061 = vmatpush.msra.mxu2 %v2311_v45  ;;  %1081 = vmatpush.msra.mxu3 %v2314_v46 }
 0x2d9   :  { %1022 = vmatpush.msrb.mxu0 %v2317_v54  ;;  %1042 = vmatpush.msrb.mxu1 %v2320_v58 }
 0x2da   :  { %1062 = vmatpush.msra.mxu2 %v2323_v55  ;;  %1082 = vmatpush.msra.mxu3 %v2326_v57 }
 0x2db   :  { %1023 = vmatpush.msrb.mxu0 %v2329_v59  ;;  %1043 = vmatpush.msrb.mxu1 %v2332_v1 }
 0x2dc   :  { %1063 = vmatpush.msra.mxu2 %v2335_v2  ;;  %1083 = vmatpush.msra.mxu3 %v2841_v0 }
 0x2dd   :  { %1024 = vmatpush.msrb.mxu0 %v2341_v4  ;;  %1044 = vmatpush.msrb.mxu1 %v2344_v5 }
 0x2de   :  { %1064 = vmatpush.msra.mxu2 %v2347_v56  ;;  %1084 = vmatpush.msra.mxu3 %v2426_v50 }
 0x2df   :  { %1025 = vmatpush.msrb.mxu0 %v2351_v60  ;;  %1045 = vmatpush.msrb.mxu1 %v2430_v51 }
 0x2e0   :  { %1065 = vmatpush.msra.mxu2 %v2355_v61  ;;  %1085 = vmatpush.msra.mxu3 %v2434_v52 }
 0x2e1   :  { %1026 = vmatpush.msrb.mxu0 %v2437_v53  ;;  %1046 = vmatpush.msrb.mxu1 %v2440_v6 }
 0x2e2   :  { %1066 = vmatpush.msra.mxu2 %v2443_v7  ;;  %1086 = vmatpush.msra.mxu3 %v2446_v8 }
 0x2e3   :  { %1027 = vmatpush.msrb.mxu0 %v2449_v9  ;;  %1047 = vmatpush.msrb.mxu1 %v2452_v10 }
 0x2e4   :  { %1067 = vmatpush.msra.mxu2 %v2455_v11  ;;  %1087 = vmatpush.msra.mxu3 %v2458_v12 }
 0x2e5   :  { %1028 = vmatpush.msrb.mxu0 %v2461_v13  ;;  %1048 = vmatpush.msrb.mxu1 %v2464_v14  ;;  %v2865_v13 = vld [vmem:[#allocation49_spill] sm:$0xff] }
 0x2e6   :  { %1068 = vmatpush.msra.mxu2 %v2467_v17  ;;  %1088 = vmatpush.msra.mxu3 %v2470_v18  ;;  %v2864_v17 = vld [vmem:[#allocation48_spill] sm:$0xff] }
 0x2e7   :  { %1029 = vmatpush.msrb.mxu0 %v2473_v19  ;;  %1049 = vmatpush.msrb.mxu1 %v2476_v20 }
 0x2e8   :  { %1069 = vmatpush.msra.mxu2 %v2479_v21  ;;  %1089 = vmatpush.msra.mxu3 %v2482_v22  ;;  %v2862_v22 = vld [vmem:[#allocation47_spill] sm:$0xff]  ;;  %v2863_v21 = vld [vmem:[#allocation46_spill] sm:$0xff] }
 0x2e9   :  { %1030 = vmatpush.msrb.mxu0 %v2485_v23  ;;  %1050 = vmatpush.msrb.mxu1 %v2488_v24  ;;  %v2506_v24 = vld [vmem:[#allocation3 + $0x18] sm:$0xff] }
 0x2ea   :  { %1070 = vmatpush.msra.mxu2 %v2491_v25  ;;  %1090 = vmatpush.msra.mxu3 %v2494_v27  ;;  %2861 = vst [vmem:[#allocation28_spill] sm:$0xff] %v2506_v24 }
 0x2eb   :  { %1031 = vmatpush.msrb.mxu0 %v2497_v47  ;;  %1051 = vmatpush.msrb.mxu1 %v2500_v48 }
 0x2ec   :  { %1071 = vmatpush.msra.mxu2 %v2503_v49  ;;  %1091 = vmatpush.msra.mxu3 %v2506_v24 }
 0x348   :  { %v815_v25 = vpop.f32.mrf.mxu0  ;;  %v835_v23 = vpop.f32.mrf.mxu1 }
 0x349   :  { %v878_v27 = vadd.f32 %v815_v25, %v2862_v22  ;;  %v879_v20 = vadd.f32 %v835_v23, %v2863_v21 }
 0x34b   :  { %v882_v19 = vmul.f32 0.5, %v878_v27  ;;  %v886_v47 = vmul.f32 0.5, %v879_v20 }
 0x34d   :  { %1405 = vtanh.f32 %v882_v19 }
 0x34e   :  { %1407 = vtanh.f32 %v886_v47  ;;  %v1242_v47 = vld [vmem:[%s2658_s3 + $0x78] sm:$0xff] }
 0x34f   :  { %v855_v18 = vpop.f32.mrf.mxu2  ;;  %v875_v48 = vpop.f32.mrf.mxu3 }
 0x350   :  { %v880_v14 = vadd.f32 %v855_v18, %v2864_v17  ;;  %v881_v49 = vadd.f32 %v875_v48, %v2865_v13 }
 0x352   :  { %1409 = vtanh.f32 %v880_v14  ;;  %v891_v12 = vmul.f32 0.5, %v881_v49 }
 0x353   :  { %v1406_v11 = vpop.eup %1405 }
 0x354   :  { %v1408_v24 = vpop.eup %1407  ;;  %v884_v10 = vmul.f32 0.5, %v1406_v11  ;;  %1411 = vtanh.f32 %v891_v12 }
 0x355   :  { %v888_v9 = vmul.f32 0.5, %v1408_v24 }
 0x356   :  { %v885_v22 = vadd.f32 0.5, %v884_v10 }
 0x357   :  { %v889_v25 = vadd.f32 0.5, %v888_v9 }
 0x358   :  { %v1410_v21 = vpop.eup %1409 }
 0x359   :  { %v895_v20 = vmul.f32 %v889_v25, %v2388_v26  ;;  %v896_v19 = vmul.f32 %v1410_v21, %v885_v22  ;;  %v2890_v22 = vld [vmem:[#allocation30_spill] sm:$0xff]  ;;  %v2891_v21 = vld [vmem:[#allocation31_spill] sm:$0xff] }
 0x35a   :  { %v1412_v23 = vpop.eup %1411 }
 0x35b   :  { %v2514_v27 = vadd.f32 %v896_v19, %v895_v20  ;;  %v893_v17 = vmul.f32 0.5, %v1412_v23 }
 0x35d   :  { %1413 = vtanh.f32 %v2514_v27  ;;  %v894_v13 = vadd.f32 0.5, %v893_v17 }
 0x363   :  { %v1414_v14 = vpop.eup %1413 }
 0x364   :  { %v899_v18 = vmul.f32 %v1414_v14, %v894_v13  ;;  %v2892_v13 = vld [vmem:[#allocation54_spill] sm:$0xff] }
 0x366   :  { %923 = vmatmul.f32.vlgmr.msra.gmra.mxu0 %v899_v18  ;;  %943 = vmatmul.f32.vlgmr.msra.gmra.mxu1 %v899_v18 }
 0x367   :  { %963 = vmatmul.f32.vlgmr.msrb.gmra.mxu2 %v899_v18  ;;  %983 = vmatmul.f32.vlgmr.msrb.gmra.mxu3 %v899_v18  ;;  %v2893_v18 = vld [vmem:[#allocation55_spill] sm:$0xff] }
 0x368   :  { %1125 = vmatpush.msra.mxu0 %v2245_v3  ;;  %1145 = vmatpush.msra.mxu1 %v2248_v63  ;;  %v2866_v3 = vld [vmem:[#allocation35_spill] sm:$0xff]  ;;  %v2867_v63 = vld [vmem:[#allocation34_spill] sm:$0xff] }
 0x369   :  { %1165 = vmatpush.msrb.mxu2 %v2251_v16  ;;  %1185 = vmatpush.msrb.mxu3 %v2254_v43  ;;  %v2868_v16 = vld [vmem:[#allocation38_spill] sm:$0xff]  ;;  %v2869_v43 = vld [vmem:[#allocation39_spill] sm:$0xff] }
 0x36a   :  { %1126 = vmatpush.msra.mxu0 %v2257_v30  ;;  %1146 = vmatpush.msra.mxu1 %v2260_v15  ;;  %v2870_v30 = vld [vmem:[#allocation9_spill] sm:$0xff]  ;;  %v2871_v15 = vld [vmem:[#allocation12_spill] sm:$0xff] }
 0x36b   :  { %1166 = vmatpush.msrb.mxu2 %v2263_v62  ;;  %1186 = vmatpush.msrb.mxu3 %v2266_v28  ;;  %v2872_v62 = vld [vmem:[#allocation10_spill] sm:$0xff]  ;;  %v2873_v28 = vld [vmem:[#allocation17_spill] sm:$0xff] }
 0x36c   :  { %1127 = vmatpush.msra.mxu0 %v2269_v29  ;;  %1147 = vmatpush.msra.mxu1 %v2272_v31  ;;  %v2874_v29 = vld [vmem:[#allocation13_spill] sm:$0xff]  ;;  %v2875_v31 = vld [vmem:[#allocation14_spill] sm:$0xff] }
 0x36d   :  { %1167 = vmatpush.msrb.mxu2 %v2275_v32  ;;  %1187 = vmatpush.msrb.mxu3 %v2278_v33  ;;  %v2876_v32 = vld [vmem:[#allocation16_spill] sm:$0xff]  ;;  %v2877_v33 = vld [vmem:[#allocation19_spill] sm:$0xff] }
 0x36e   :  { %1128 = vmatpush.msra.mxu0 %v2281_v34  ;;  %1148 = vmatpush.msra.mxu1 %v2284_v35  ;;  %v2878_v34 = vld [vmem:[#allocation15_spill] sm:$0xff]  ;;  %v2879_v35 = vld [vmem:[#allocation20_spill] sm:$0xff] }
 0x36f   :  { %1168 = vmatpush.msrb.mxu2 %v2287_v36  ;;  %1188 = vmatpush.msrb.mxu3 %v2290_v37  ;;  %v2880_v36 = vld [vmem:[#allocation18_spill] sm:$0xff] }
 0x370   :  { %1129 = vmatpush.msra.mxu0 %v2293_v38  ;;  %1149 = vmatpush.msra.mxu1 %v2296_v39  ;;  %v2881_v37 = vld [vmem:[#allocation26_spill] sm:$0xff]  ;;  %v2882_v38 = vld [vmem:[#allocation21_spill] sm:$0xff] }
 0x371   :  { %1169 = vmatpush.msrb.mxu2 %v2299_v40  ;;  %1189 = vmatpush.msrb.mxu3 %v2302_v41  ;;  %v2883_v39 = vld [vmem:[#allocation22_spill] sm:$0xff]  ;;  %v2884_v40 = vld [vmem:[#allocation25_spill] sm:$0xff]  ;;  %v2885_v41 = vld [vmem:[#allocation28_spill] sm:$0xff] }
 0x372   :  { %1130 = vmatpush.msra.mxu0 %v2305_v42  ;;  %1150 = vmatpush.msra.mxu1 %v2308_v44 }
 0x373   :  { %1170 = vmatpush.msrb.mxu2 %v2311_v45  ;;  %1190 = vmatpush.msrb.mxu3 %v2314_v46  ;;  %v2886_v45 = vld [vmem:[#allocation51_spill] sm:$0xff] }
 0x374   :  { %1131 = vmatpush.msra.mxu0 %v2317_v54  ;;  %1151 = vmatpush.msra.mxu1 %v2320_v58  ;;  %v2887_v54 = vld [vmem:[#allocation50_spill] sm:$0xff] }
 0x375   :  { %1171 = vmatpush.msrb.mxu2 %v2323_v55  ;;  %1191 = vmatpush.msrb.mxu3 %v2326_v57 }
 0x376   :  { %1132 = vmatpush.msra.mxu0 %v2329_v59  ;;  %1152 = vmatpush.msra.mxu1 %v2332_v1 }
 0x377   :  { %1172 = vmatpush.msrb.mxu2 %v2335_v2  ;;  %1192 = vmatpush.msrb.mxu3 %v2841_v0  ;;  %v2888_v2 = vld [vmem:[#allocation52_spill] sm:$0xff] }
 0x378   :  { %1133 = vmatpush.msra.mxu0 %v2341_v4  ;;  %1153 = vmatpush.msra.mxu1 %v2344_v5  ;;  %v2889_v4 = vld [vmem:[#allocation53_spill] sm:$0xff] }
 0x379   :  { %1173 = vmatpush.msrb.mxu2 %v2347_v56  ;;  %1193 = vmatpush.msrb.mxu3 %v2426_v50 }
 0x37a   :  { %1134 = vmatpush.msra.mxu0 %v2351_v60  ;;  %1154 = vmatpush.msra.mxu1 %v2430_v51 }
 0x37b   :  { %1174 = vmatpush.msrb.mxu2 %v2355_v61  ;;  %1194 = vmatpush.msrb.mxu3 %v2434_v52 }
 0x37c   :  { %1135 = vmatpush.msra.mxu0 %v2437_v53  ;;  %1155 = vmatpush.msra.mxu1 %v2440_v6 }
 0x37d   :  { %1175 = vmatpush.msrb.mxu2 %v2443_v7  ;;  %1195 = vmatpush.msrb.mxu3 %v2446_v8 }
 0x37e   :  { %1136 = vmatpush.msra.mxu0 %v2866_v3  ;;  %1156 = vmatpush.msra.mxu1 %v2867_v63 }
 0x37f   :  { %1176 = vmatpush.msrb.mxu2 %v2868_v16  ;;  %1196 = vmatpush.msrb.mxu3 %v2869_v43 }
 0x380   :  { %1137 = vmatpush.msra.mxu0 %v2870_v30  ;;  %1157 = vmatpush.msra.mxu1 %v2871_v15 }
 0x381   :  { %1177 = vmatpush.msrb.mxu2 %v2872_v62  ;;  %1197 = vmatpush.msrb.mxu3 %v2873_v28 }
 0x382   :  { %1138 = vmatpush.msra.mxu0 %v2874_v29  ;;  %1158 = vmatpush.msra.mxu1 %v2875_v31 }
 0x383   :  { %1178 = vmatpush.msrb.mxu2 %v2876_v32  ;;  %1198 = vmatpush.msrb.mxu3 %v2877_v33 }
 0x384   :  { %1139 = vmatpush.msra.mxu0 %v2878_v34  ;;  %1159 = vmatpush.msra.mxu1 %v2879_v35 }
 0x385   :  { %1179 = vmatpush.msrb.mxu2 %v2880_v36  ;;  %1199 = vmatpush.msrb.mxu3 %v2881_v37 }
 0x386   :  { %1140 = vmatpush.msra.mxu0 %v2882_v38  ;;  %1160 = vmatpush.msra.mxu1 %v2883_v39  ;;  %v1241_v39 = vld [vmem:[%s2658_s3 + $0x70] sm:$0xff] }
 0x387   :  { %1180 = vmatpush.msrb.mxu2 %v2884_v40  ;;  %1200 = vmatpush.msrb.mxu3 %v2885_v41  ;;  %v1240_v40 = vld [vmem:[%s2658_s3 + $0x68] sm:$0xff]  ;;  %v1239_v41 = vld [vmem:[%s2658_s3 + $0x60] sm:$0xff] }
 0x3e3   :  { %v924_v42 = vpop.f32.mrf.mxu0  ;;  %v944_v44 = vpop.f32.mrf.mxu1 }
 0x3e4   :  { %v987_v46 = vadd.f32 %v924_v42, %v2886_v45  ;;  %v988_v58 = vadd.f32 %v944_v44, %v2887_v54  ;;  %v1238_v42 = vld [vmem:[%s2658_s3 + $0x58] sm:$0xff]  ;;  %v1237_v44 = vld [vmem:[%s2658_s3 + $0x50] sm:$0xff]  ;;  %v1236_v45 = vld [vmem:[%s2658_s3 + $0x48] sm:$0xff] }
 0x3e5   :  { %v1234_v54 = vld [vmem:[%s2658_s3 + $0x38] sm:$0xff] }
 0x3e6   :  { %v991_v55 = vmul.f32 0.5, %v987_v46  ;;  %v995_v57 = vmul.f32 0.5, %v988_v58  ;;  %v1235_v46 = vld [vmem:[%s2658_s3 + $0x40] sm:$0xff]  ;;  %v1233_v58 = vld [vmem:[%s2658_s3 + $0x30] sm:$0xff] }
 0x3e8   :  { %1415 = vtanh.f32 %v991_v55  ;;  %v1232_v55 = vld [vmem:[%s2658_s3 + $0x28] sm:$0xff] }
 0x3e9   :  { %1417 = vtanh.f32 %v995_v57  ;;  %v1231_v57 = vld [vmem:[%s2658_s3 + $0x20] sm:$0xff] }
 0x3ea   :  { %v964_v59 = vpop.f32.mrf.mxu2  ;;  %v984_v1 = vpop.f32.mrf.mxu3 }
 0x3eb   :  { %v989_v61 = vadd.f32 %v964_v59, %v2888_v2  ;;  %v990_v5 = vadd.f32 %v984_v1, %v2889_v4  ;;  %v1230_v59 = vld [vmem:[%s2658_s3 + $0x18] sm:$0xff]  ;;  %v1229_v1 = vld [vmem:[%s2658_s3 + $0x10] sm:$0xff]  ;;  %v1228_v2 = vld [vmem:[%s2658_s3 + $0x8] sm:$0xff] }
 0x3ec   :  { %v1283_v4 = vld [vmem:[#allocation5 + $0x78] sm:$0xff] }
 0x3ed   :  { %1419 = vtanh.f32 %v989_v61  ;;  %v1000_v56 = vmul.f32 0.5, %v990_v5  ;;  %v1227_v61 = vld [vmem:[%s2658_s3] sm:$0xff]  ;;  %v1282_v5 = vld [vmem:[#allocation5 + $0x70] sm:$0xff] }
 0x3ee   :  { %v1416_v60 = vpop.eup %1415 }
 0x3ef   :  { %v1418_v26 = vpop.eup %1417  ;;  %v993_v0 = vmul.f32 0.5, %v1416_v60  ;;  %1421 = vtanh.f32 %v1000_v56 }
 0x3f0   :  { %v997_v50 = vmul.f32 0.5, %v1418_v26  ;;  %v1281_v26 = vld [vmem:[#allocation5 + $0x68] sm:$0xff] }
 0x3f1   :  { %v994_v51 = vadd.f32 0.5, %v993_v0  ;;  %v2894_v0 = vld [vmem:[#allocation32_spill] sm:$0xff] }
 0x3f2   :  { %v998_v52 = vadd.f32 0.5, %v997_v50 }
 0x3f3   :  { %v1420_v53 = vpop.eup %1419 }
 0x3f4   :  { %v1004_v6 = vmul.f32 %v998_v52, %v2514_v27  ;;  %v1005_v7 = vmul.f32 %v1420_v53, %v994_v51  ;;  %v2895_v51 = vld [vmem:[#allocation33_spill] sm:$0xff] }
 0x3f5   :  { %v1422_v8 = vpop.eup %1421  ;;  %v1280_v53 = vld [vmem:[#allocation5 + $0x60] sm:$0xff] }
 0x3f6   :  { %v1006_v9 = vadd.f32 %v1005_v7, %v1004_v6  ;;  %v1002_v10 = vmul.f32 0.5, %v1422_v8  ;;  %v1279_v8 = vld [vmem:[#allocation5 + $0x58] sm:$0xff] }
 0x3f8   :  { %1423 = vtanh.f32 %v1006_v9  ;;  %v1003_v11 = vadd.f32 0.5, %v1002_v10 }
 0x3fe   :  { %v1424_v12 = vpop.eup %1423 }
 0x3ff   :  { %v1008_v24 = vmul.f32 %v1424_v12, %v1003_v11  ;;  %v2896_v12 = vld [vmem:[#allocation56_spill] sm:$0xff] }
 0x401   :  { %1032 = vmatmul.f32.vlgmr.msrb.gmra.mxu0 %v1008_v24  ;;  %1052 = vmatmul.f32.vlgmr.msrb.gmra.mxu1 %v1008_v24 }
 0x402   :  { %1072 = vmatmul.f32.vlgmr.msra.gmra.mxu2 %v1008_v24  ;;  %1092 = vmatmul.f32.vlgmr.msra.gmra.mxu3 %v1008_v24 }
 0x403   :  { %1247 = vmatpush.msrb.mxu0 %v1242_v47  ;;  %1288 = vmatpush.msrb.mxu1 %v1283_v4  ;;  %v2897_v47 = vld [vmem:[#allocation57_spill] sm:$0xff] }
 0x405   :  { %1248 = vmatpush.msrb.mxu0 %v1241_v39  ;;  %1289 = vmatpush.msrb.mxu1 %v1282_v5 }
 0x407   :  { %1249 = vmatpush.msrb.mxu0 %v1240_v40  ;;  %1290 = vmatpush.msrb.mxu1 %v1281_v26  ;;  %v1364_v40 = vld [vmem:[%s2661_s6] ss:$0 sm:$0xff] }
 0x409   :  { %1250 = vmatpush.msrb.mxu0 %v1239_v41  ;;  %1291 = vmatpush.msrb.mxu1 %v1280_v53 }
 0x40b   :  { %1251 = vmatpush.msrb.mxu0 %v1238_v42  ;;  %1292 = vmatpush.msrb.mxu1 %v1279_v8 }
 0x40d   :  { %1252 = vmatpush.msrb.mxu0 %v1237_v44 }
 0x40f   :  { %1253 = vmatpush.msrb.mxu0 %v1236_v45 }
 0x411   :  { %1254 = vmatpush.msrb.mxu0 %v1235_v46 }
 0x413   :  { %1255 = vmatpush.msrb.mxu0 %v1234_v54 }
 0x415   :  { %1256 = vmatpush.msrb.mxu0 %v1233_v58 }
 0x417   :  { %1257 = vmatpush.msrb.mxu0 %v1232_v55 }
 0x419   :  { %1258 = vmatpush.msrb.mxu0 %v1231_v57 }
 0x41b   :  { %1259 = vmatpush.msrb.mxu0 %v1230_v59 }
 0x41d   :  { %1260 = vmatpush.msrb.mxu0 %v1229_v1 }
 0x41f   :  { %1261 = vmatpush.msrb.mxu0 %v1228_v2 }
 0x421   :  { %1262 = vmatpush.msrb.mxu0 %v1227_v61 }
 0x47e   :  { %v1033_v48 = vpop.f32.mrf.mxu0  ;;  %v1053_v49 = vpop.f32.mrf.mxu1 }
 0x47f   :  { %v1096_v25 = vadd.f32 %v1033_v48, %v2890_v22  ;;  %v1097_v20 = vadd.f32 %v1053_v49, %v2891_v21  ;;  %v1277_v49 = vld [vmem:[#allocation5 + $0x48] sm:$0xff] }
 0x481   :  { %v1100_v19 = vmul.f32 0.5, %v1096_v25  ;;  %v1104_v23 = vmul.f32 0.5, %v1097_v20  ;;  %v1276_v25 = vld [vmem:[#allocation5 + $0x40] sm:$0xff] }
 0x483   :  { %1425 = vtanh.f32 %v1100_v19 }
 0x484   :  { %1427 = vtanh.f32 %v1104_v23  ;;  %v1275_v23 = vld [vmem:[#allocation5 + $0x38] sm:$0xff] }
 0x485   :  { %v1073_v27 = vpop.f32.mrf.mxu2  ;;  %v1093_v17 = vpop.f32.mrf.mxu3 }
 0x486   :  { %v1098_v14 = vadd.f32 %v1073_v27, %v2892_v13  ;;  %v1099_v3 = vadd.f32 %v1093_v17, %v2893_v18  ;;  %v1274_v13 = vld [vmem:[#allocation5 + $0x30] sm:$0xff] }
 0x488   :  { %1429 = vtanh.f32 %v1098_v14  ;;  %v1109_v63 = vmul.f32 0.5, %v1099_v3  ;;  %v1273_v3 = vld [vmem:[#allocation5 + $0x28] sm:$0xff] }
 0x489   :  { %v1426_v16 = vpop.eup %1425 }
 0x48a   :  { %v1428_v43 = vpop.eup %1427  ;;  %v1102_v30 = vmul.f32 0.5, %v1426_v16  ;;  %1431 = vtanh.f32 %v1109_v63 }
 0x48b   :  { %v1106_v15 = vmul.f32 0.5, %v1428_v43  ;;  %v1272_v43 = vld [vmem:[#allocation5 + $0x20] sm:$0xff] }
 0x48c   :  { %v1103_v62 = vadd.f32 0.5, %v1102_v30 }
 0x48d   :  { %v1107_v28 = vadd.f32 0.5, %v1106_v15 }
 0x48e   :  { %v1430_v29 = vpop.eup %1429 }
 0x48f   :  { %v1113_v31 = vmul.f32 %v1107_v28, %v1006_v9  ;;  %v1114_v32 = vmul.f32 %v1430_v29, %v1103_v62  ;;  %v1278_v9 = vld [vmem:[#allocation5 + $0x50] sm:$0xff]  ;;  %v1271_v62 = vld [vmem:[#allocation5 + $0x18] sm:$0xff] }
 0x490   :  { %v1432_v33 = vpop.eup %1431  ;;  %1293 = vmatpush.msrb.mxu1 %v1278_v9 }
 0x491   :  { %v2593_v34 = vadd.f32 %v1114_v32, %v1113_v31  ;;  %v1111_v35 = vmul.f32 0.5, %v1432_v33  ;;  %v1270_v33 = vld [vmem:[#allocation5 + $0x10] sm:$0xff] }
 0x492   :  { %1294 = vmatpush.msrb.mxu1 %v1277_v49 }
 0x493   :  { %1433 = vtanh.f32 %v2593_v34  ;;  %v1112_v36 = vadd.f32 0.5, %v1111_v35  ;;  %v1269_v35 = vld [vmem:[#allocation5 + $0x8] sm:$0xff] }
 0x494   :  { %1295 = vmatpush.msrb.mxu1 %v1276_v25 }
 0x496   :  { %1296 = vmatpush.msrb.mxu1 %v1275_v23 }
 0x498   :  { %1297 = vmatpush.msrb.mxu1 %v1274_v13 }
 0x499   :  { %v1434_v37 = vpop.eup %1433 }
 0x49a   :  { %v1117_v38 = vmul.f32 %v1434_v37, %v1112_v36  ;;  %1298 = vmatpush.msrb.mxu1 %v1273_v3  ;;  %v1363_v36 = vld [vmem:[%s2659_s4] ss:$0 sm:$0xff] }
 0x49c   :  { %1141 = vmatmul.f32.vlgmr.msra.gmra.mxu0 %v1117_v38  ;;  %1161 = vmatmul.f32.vlgmr.msra.gmra.mxu1 %v1117_v38 }
 0x49d   :  { %1181 = vmatmul.f32.vlgmr.msrb.gmra.mxu2 %v1117_v38  ;;  %1201 = vmatmul.f32.vlgmr.msrb.gmra.mxu3 %v1117_v38 }
 0x49e   :  { %1299 = vmatpush.msrb.mxu1 %v1272_v43 }
 0x4a0   :  { %1300 = vmatpush.msrb.mxu1 %v1271_v62 }
 0x4a2   :  { %1301 = vmatpush.msrb.mxu1 %v1270_v33 }
 0x4a4   :  { %1302 = vmatpush.msrb.mxu1 %v1269_v35 }
 0x519   :  { %v1142_v56 = vpop.f32.mrf.mxu0  ;;  %v1162_v60 = vpop.f32.mrf.mxu1 }
 0x51a   :  { %v1205_v50 = vadd.f32 %v1142_v56, %v2894_v0  ;;  %v1206_v52 = vadd.f32 %v1162_v60, %v2895_v51 }
 0x51c   :  { %v1209_v6 = vmul.f32 0.5, %v1205_v50  ;;  %v1213_v7 = vmul.f32 0.5, %v1206_v52 }
 0x51e   :  { %1435 = vtanh.f32 %v1209_v6 }
 0x51f   :  { %1437 = vtanh.f32 %v1213_v7 }
 0x520   :  { %v1182_v10 = vpop.f32.mrf.mxu2  ;;  %v1202_v11 = vpop.f32.mrf.mxu3 }
 0x521   :  { %v1207_v24 = vadd.f32 %v1182_v10, %v2896_v12  ;;  %v1208_v48 = vadd.f32 %v1202_v11, %v2897_v47 }
 0x523   :  { %1439 = vtanh.f32 %v1207_v24  ;;  %v1218_v22 = vmul.f32 0.5, %v1208_v48 }
 0x524   :  { %v1436_v21 = vpop.eup %1435 }
 0x525   :  { %v1438_v20 = vpop.eup %1437  ;;  %v1211_v19 = vmul.f32 0.5, %v1436_v21  ;;  %1441 = vtanh.f32 %v1218_v22 }
 0x526   :  { %v1215_v27 = vmul.f32 0.5, %v1438_v20 }
 0x527   :  { %v1212_v17 = vadd.f32 0.5, %v1211_v19 }
 0x528   :  { %v1216_v14 = vadd.f32 0.5, %v1215_v27 }
 0x529   :  { %v1440_v18 = vpop.eup %1439 }
 0x52a   :  { %v1222_v63 = vmul.f32 %v1216_v14, %v2593_v34  ;;  %v1223_v16 = vmul.f32 %v1440_v18, %v1212_v17  ;;  %v1268_v34 = vld [vmem:[#allocation5] sm:$0xff] }
 0x52b   :  { %v1442_v30 = vpop.eup %1441  ;;  %1303 = vmatpush.msrb.mxu1 %v1268_v34 }
 0x52c   :  { %v1224_v15 = vadd.f32 %v1223_v16, %v1222_v63  ;;  %v1220_v28 = vmul.f32 0.5, %v1442_v30 }
 0x52e   :  { %1443 = vtanh.f32 %v1224_v15  ;;  %v1221_v29 = vadd.f32 0.5, %v1220_v28 }
 0x534   :  { %v1444_v31 = vpop.eup %1443 }
 0x535   :  { %v1226_v32 = vmul.f32 %v1444_v31, %v1221_v29 }
 0x537   :  { %1263 = vmatmul.f32.vlgmr.msrb.gmra.mxu0 %v1226_v32 }
 0x5b4   :  { %v1264_v37 = vpop.f32.mrf.mxu0 }
 0x5b5   :  { %v1265_v38 = vadd.f32 %v1363_v36, %v1264_v37 }
 0x5b7   :  { %v1267_v39 = vmax.f32 %v1265_v38, 0.0 }
 0x5b9   :  { %1304 = vmatmul.f32.vlgmr.msrb.gmra.mxu1 %v1267_v39 }
 0x636   :  { %v1305_v41 = vpop.f32.mrf.mxu1 }
 0x637   :  { %v1306_v42 = vadd.f32 %v1364_v40, %v1305_v41 }
 0x639   :  { %1308 = vst [vmem:[%s2662_s7] sm:$0xff] %v1306_v42 }
 0x63a   :  { %1313 = vsyncpa [#allocation4], 1 }
 0x63b   :  { %1314 = vsyncpa [#allocation6], 1 }

</bundles_post_ra>
